<compile_context>
chip_gen: v7x
topology: tpu7x:2x2x1
jax: 0.10.0
libtpu: 0.0.40
codegen_flags: <defaults>
</compile_context>

<pallas_src>
import functools

import jax
import jax.numpy as jnp
from jax.experimental import pallas as pl
from jax.experimental.pallas import tpu as pltpu

# MLP dims from ExamMNIST: 784 -> 512 -> 256 -> 128 -> 64 -> 10
DIMS = (784, 512, 256, 128, 64, 10)
OUT_PAD = 128          # pad the 10 logits to a full 128-lane vreg (dense vst)
MAX_BATCH_TILE = 1024  # rows per grid step (MXU M dimension); main tuning knob


def _round_up(x, m):
    return ((x + m - 1) // m) * m


def _choose_tiling(batch):
    """Batch tiling policy:
      * batch <= MAX_BATCH_TILE: a single grid step, tile = round_up(batch, 8)
        (never split small batches -- v5e/v6e have one TensorCore and splitting
        only shrinks the MXU M dim and adds ~0.35 us/step overhead).
      * batch  > MAX_BATCH_TILE: split into an EVEN number of steps so v7x's
        two TensorCores get balanced work under dimension_semantics="parallel".
    Returns (tile, padded_batch)."""
    if batch <= MAX_BATCH_TILE:
        tile = _round_up(max(batch, 8), 8)
        steps = 1
    else:
        steps = -(-batch // MAX_BATCH_TILE)
        if steps % 2:
            steps += 1          # even step count -> balanced megacore split
        tile = _round_up(-(-batch // steps), 8)
    return tile, tile * steps


def _vmem_limit_bytes(tile, compute_dtype, out_dtype):
    """Scoped-VMEM cap computed from the actual footprint (2x headroom)."""
    cbytes = jnp.dtype(compute_dtype).itemsize
    obytes = jnp.dtype(out_dtype).itemsize
    x_buf = tile * DIMS[0] * cbytes * 2                       # double-buffered x
    o_buf = tile * OUT_PAD * obytes * 2                       # double-buffered out
    w_elems = sum(DIMS[i] * DIMS[i + 1] for i in range(len(DIMS) - 2))
    w_elems += DIMS[-2] * OUT_PAD                              # padded logits layer
    b_elems = sum(DIMS[1:-1]) + OUT_PAD
    resident = (w_elems * cbytes + b_elems * 4) * 2            # weights/biases, 2 bufs
    total = x_buf + o_buf + resident
    # 2x headroom for activation temporaries; floor 16 MiB; cap 48 MiB (well
    # under v7x's 64 MiB physical VMEM, trivially safe on v5e/v6e's 128 MiB).
    return int(min(max(2 * total, 16 * 1024 * 1024), 48 * 1024 * 1024))


def _mlp_kernel(x_ref,
                w1_ref, b1_ref,
                w2_ref, b2_ref,
                w3_ref, b3_ref,
                w4_ref, b4_ref,
                w5_ref, b5_ref,
                o_ref):
    """Fused 5-layer MLP on one batch tile; all weights resident in VMEM.

    x arrives already in the MXU compute dtype (bf16 by default); accumulation
    is f32 via preferred_element_type; bias add + ReLU stay in f32."""
    cdt = w1_ref.dtype

    h = jnp.maximum(
        jnp.dot(x_ref[...], w1_ref[...], preferred_element_type=jnp.float32)
        + b1_ref[...], 0.0)
    h = jnp.maximum(
        jnp.dot(h.astype(cdt), w2_ref[...], preferred_element_type=jnp.float32)
        + b2_ref[...], 0.0)
    h = jnp.maximum(
        jnp.dot(h.astype(cdt), w3_ref[...], preferred_element_type=jnp.float32)
        + b3_ref[...], 0.0)
    h = jnp.maximum(
        jnp.dot(h.astype(cdt), w4_ref[...], preferred_element_type=jnp.float32)
        + b4_ref[...], 0.0)
    # Final layer: no ReLU (logits). Output width is lane-padded to 128.
    o_ref[...] = (jnp.dot(h.astype(cdt), w5_ref[...], preferred_element_type=jnp.float32)
                  + b5_ref[...]).astype(o_ref.dtype)


@functools.partial(jax.jit,
                   static_argnames=("compute_dtype", "out_dtype", "batch_tile"))
def exam_mnist_forward(x, params, *, compute_dtype=jnp.bfloat16,
                       out_dtype=jnp.float32, batch_tile=None):
    """x: (B, 1, 28, 28) / (B, 784) float32.
    params: list of (W, b), W of shape (in, out), b of shape (1, out)."""
    x2d = x.reshape(-1, DIMS[0])
    b = x2d.shape[0]
    # Stream x at compute_dtype (bf16 by default): XLA fuses this cast with the
    # reshape/pad producer, so the kernel's HBM input bytes are halved.
    x2d = x2d.astype(compute_dtype)

    if batch_tile is not None:
        tile = max(8, _round_up(min(batch_tile, MAX_BATCH_TILE), 8))
        b_pad = _round_up(b, tile)
    else:
        tile, b_pad = _choose_tiling(b)
    if b_pad != b:
        # Pad AFTER the bf16 cast so the extra HBM copy is half-width.
        # TODO(synk): for very large ragged batches, handle only the last
        # partial tile specially instead of padding the whole array.
        x2d = jnp.pad(x2d, ((0, b_pad - b), (0, 0)))

    flat_params = []
    w_specs = []
    for li, (w, bias) in enumerate(params):
        # bf16 weights: ~2x MXU throughput on v6e/v7x and half the resident
        # VMEM; biases stay f32 and are added after the f32-accumulated dot.
        w = w.astype(compute_dtype)
        bias = bias.astype(jnp.float32)
        if li == len(params) - 1:
            # Zero-pad the logits layer to 128 lanes -> lane-dense output
            # store; extra columns are zeros and sliced off below.
            w = jnp.pad(w, ((0, 0), (0, OUT_PAD - w.shape[1])))
            bias = jnp.pad(bias, ((0, 0), (0, OUT_PAD - bias.shape[1])))
        # Full-array block, constant index map: fetched once, kept resident in
        # VMEM for every grid step (no re-DMA per step).
        w_specs.append(pl.BlockSpec(w.shape, lambda i: (0, 0)))
        w_specs.append(pl.BlockSpec(bias.shape, lambda i: (0, 0)))
        flat_params.extend([w, bias])

    grid = (b_pad // tile,)
    out = pl.pallas_call(
        _mlp_kernel,
        out_shape=jax.ShapeDtypeStruct((b_pad, OUT_PAD), out_dtype),
        grid_spec=pltpu.PrefetchScalarGridSpec(
            num_scalar_prefetch=0,
            grid=grid,
            in_specs=[pl.BlockSpec((tile, DIMS[0]), lambda i: (i, 0))] + w_specs,
            out_specs=pl.BlockSpec((tile, OUT_PAD), lambda i: (i, 0)),
        ),
        compiler_params=pltpu.CompilerParams(
            dimension_semantics=("parallel",),
            vmem_limit_bytes=_vmem_limit_bytes(tile, compute_dtype, out_dtype),
        ),
    )(x2d, *flat_params)

    return out[:b, :DIMS[-1]]


def init_params(key):
    """torch.nn.Linear-style init: U(-1/sqrt(fan_in), 1/sqrt(fan_in))."""
    params = []
    for li in range(len(DIMS) - 1):
        fan_in, fan_out = DIMS[li], DIMS[li + 1]
        key, kw, kb = jax.random.split(key, 3)
        bound = 1.0 / jnp.sqrt(jnp.float32(fan_in))
        w = jax.random.uniform(kw, (fan_in, fan_out), jnp.float32,
                               minval=-bound, maxval=bound)
        bias = jax.random.uniform(kb, (1, fan_out), jnp.float32,
                                  minval=-bound, maxval=bound)
        params.append((w, bias))
    return params


def _reference_forward(x, params):
    h = x.reshape(-1, DIMS[0]).astype(jnp.float32)
    for idx, (w, bias) in enumerate(params):
        h = h @ w + bias
        if idx < len(params) - 1:
            h = jnp.maximum(h, 0.0)
    return h


if __name__ == "__main__":
    key = jax.random.PRNGKey(0)
    kp, kx = jax.random.split(key)

    params = init_params(kp)

    # Batch 37: not a multiple of 8 -> exercises the (cheap, half-width) pad
    # path while staying a single grid step (no small-batch splitting).
    x = jax.random.normal(kx, (37, 1, 28, 28), jnp.float32)
    ref = _reference_forward(x, params)

    # f32 compute path: matches the torch module numerics tightly.
    out_f32 = jax.block_until_ready(
        exam_mnist_forward(x, params, compute_dtype=jnp.float32))
    assert out_f32.shape == (37, 10), out_f32.shape
    assert jnp.allclose(out_f32, ref, atol=1e-4, rtol=1e-4), "f32 mismatch vs reference"

    # Default bf16 MXU path (f32 accumulation): loose tolerance vs f32 reference.
    out_bf16 = jax.block_until_ready(exam_mnist_forward(x, params))
    assert out_bf16.shape == (37, 10), out_bf16.shape
    assert jnp.allclose(out_bf16, ref, atol=5e-2, rtol=5e-2), "bf16 mismatch vs reference"

    # Large batch (> MAX_BATCH_TILE): exercises the even-grid-step multi-tile
    # path (2 steps of 600 rows, balanced across v7x's two TensorCores).
    xb = jax.random.normal(jax.random.PRNGKey(1), (1200, DIMS[0]), jnp.float32)
    refb = _reference_forward(xb, params)
    out_b = jax.block_until_ready(exam_mnist_forward(xb, params))
    assert out_b.shape == (1200, 10), out_b.shape
    assert jnp.allclose(out_b, refb, atol=1e-1, rtol=1e-1), "multi-step mismatch"

    print("KERNEL_OK")
</pallas_src>

<mosaic_0001>
module attributes {stable_mosaic.version = 11 : i64} {
  func.func @_mlp_kernel(%arg0: i32, %arg1: memref<40x784xf32, #tpu.memory_space<vmem>>, %arg2: memref<784x512xf32, #tpu.memory_space<vmem>>, %arg3: memref<1x512xf32, #tpu.memory_space<vmem>>, %arg4: memref<512x256xf32, #tpu.memory_space<vmem>>, %arg5: memref<1x256xf32, #tpu.memory_space<vmem>>, %arg6: memref<256x128xf32, #tpu.memory_space<vmem>>, %arg7: memref<1x128xf32, #tpu.memory_space<vmem>>, %arg8: memref<128x64xf32, #tpu.memory_space<vmem>>, %arg9: memref<1x64xf32, #tpu.memory_space<vmem>>, %arg10: memref<64x128xf32, #tpu.memory_space<vmem>>, %arg11: memref<1x128xf32, #tpu.memory_space<vmem>>, %arg12: memref<40x128xf32, #tpu.memory_space<vmem>>) attributes {dimension_semantics = [#tpu.dimension_semantics<parallel>], iteration_bounds = array<i64: 1>, scalar_prefetch = 0 : i64, scratch_operands = 0 : i64, tpu.core_type = #tpu.core_type<tc>, window_params = [{transform_indices = @transform_0, window_bounds = array<i64: 40, 784>}, {pipeline_mode = #tpu.pipeline_mode<synchronous>, transform_indices = @transform_1, window_bounds = array<i64: 784, 512>}, {pipeline_mode = #tpu.pipeline_mode<synchronous>, transform_indices = @transform_2, window_bounds = array<i64: 1, 512>}, {pipeline_mode = #tpu.pipeline_mode<synchronous>, transform_indices = @transform_3, window_bounds = array<i64: 512, 256>}, {pipeline_mode = #tpu.pipeline_mode<synchronous>, transform_indices = @transform_4, window_bounds = array<i64: 1, 256>}, {pipeline_mode = #tpu.pipeline_mode<synchronous>, transform_indices = @transform_5, window_bounds = array<i64: 256, 128>}, {pipeline_mode = #tpu.pipeline_mode<synchronous>, transform_indices = @transform_6, window_bounds = array<i64: 1, 128>}, {pipeline_mode = #tpu.pipeline_mode<synchronous>, transform_indices = @transform_7, window_bounds = array<i64: 128, 64>}, {pipeline_mode = #tpu.pipeline_mode<synchronous>, transform_indices = @transform_8, window_bounds = array<i64: 1, 64>}, {pipeline_mode = #tpu.pipeline_mode<synchronous>, transform_indices = @transform_9, window_bounds = array<i64: 64, 128>}, {pipeline_mode = #tpu.pipeline_mode<synchronous>, transform_indices = @transform_10, window_bounds = array<i64: 1, 128>}, {transform_indices = @transform_11, window_bounds = array<i64: 40, 128>}]} {
    %c0 = arith.constant 0 : index
    %c0_0 = arith.constant 0 : index
    %0 = vector.load %arg1[%c0, %c0_0] : memref<40x784xf32, #tpu.memory_space<vmem>>, vector<40x784xf32>
    %c0_1 = arith.constant 0 : index
    %c0_2 = arith.constant 0 : index
    %1 = vector.load %arg2[%c0_1, %c0_2] : memref<784x512xf32, #tpu.memory_space<vmem>>, vector<784x512xf32>
    %cst = arith.constant dense<0.000000e+00> : vector<40x512xf32>
    %2 = tpu.matmul %0, %1, %cst {dimension_numbers = #tpu.dot_dimension_numbers<[1], [0], [0], [1], [0, 0, 1, 1], [], []>} : vector<40x784xf32>, vector<784x512xf32>, vector<40x512xf32> -> vector<40x512xf32>
    %c0_3 = arith.constant 0 : index
    %c0_4 = arith.constant 0 : index
    %3 = vector.load %arg3[%c0_3, %c0_4] : memref<1x512xf32, #tpu.memory_space<vmem>>, vector<1x512xf32>
    %4 = vector.broadcast %3 : vector<1x512xf32> to vector<40x512xf32>
    %5 = arith.addf %2, %4 : vector<40x512xf32>
    %cst_5 = arith.constant 0.000000e+00 : f32
    %6 = vector.broadcast %cst_5 : f32 to vector<40x512xf32>
    %7 = arith.maximumf %5, %6 : vector<40x512xf32>
    %c0_6 = arith.constant 0 : index
    %c0_7 = arith.constant 0 : index
    %8 = vector.load %arg4[%c0_6, %c0_7] : memref<512x256xf32, #tpu.memory_space<vmem>>, vector<512x256xf32>
    %cst_8 = arith.constant dense<0.000000e+00> : vector<40x256xf32>
    %9 = tpu.matmul %7, %8, %cst_8 {dimension_numbers = #tpu.dot_dimension_numbers<[1], [0], [0], [1], [0, 0, 1, 1], [], []>} : vector<40x512xf32>, vector<512x256xf32>, vector<40x256xf32> -> vector<40x256xf32>
    %c0_9 = arith.constant 0 : index
    %c0_10 = arith.constant 0 : index
    %10 = vector.load %arg5[%c0_9, %c0_10] : memref<1x256xf32, #tpu.memory_space<vmem>>, vector<1x256xf32>
    %11 = vector.broadcast %10 : vector<1x256xf32> to vector<40x256xf32>
    %12 = arith.addf %9, %11 : vector<40x256xf32>
    %cst_11 = arith.constant 0.000000e+00 : f32
    %13 = vector.broadcast %cst_11 : f32 to vector<40x256xf32>
    %14 = arith.maximumf %12, %13 : vector<40x256xf32>
    %c0_12 = arith.constant 0 : index
    %c0_13 = arith.constant 0 : index
    %15 = vector.load %arg6[%c0_12, %c0_13] : memref<256x128xf32, #tpu.memory_space<vmem>>, vector<256x128xf32>
    %cst_14 = arith.constant dense<0.000000e+00> : vector<40x128xf32>
    %16 = tpu.matmul %14, %15, %cst_14 {dimension_numbers = #tpu.dot_dimension_numbers<[1], [0], [0], [1], [0, 0, 1, 1], [], []>} : vector<40x256xf32>, vector<256x128xf32>, vector<40x128xf32> -> vector<40x128xf32>
    %c0_15 = arith.constant 0 : index
    %c0_16 = arith.constant 0 : index
    %17 = vector.load %arg7[%c0_15, %c0_16] : memref<1x128xf32, #tpu.memory_space<vmem>>, vector<1x128xf32>
    %18 = vector.broadcast %17 : vector<1x128xf32> to vector<40x128xf32>
    %19 = arith.addf %16, %18 : vector<40x128xf32>
    %cst_17 = arith.constant 0.000000e+00 : f32
    %20 = vector.broadcast %cst_17 : f32 to vector<40x128xf32>
    %21 = arith.maximumf %19, %20 : vector<40x128xf32>
    %c0_18 = arith.constant 0 : index
    %c0_19 = arith.constant 0 : index
    %22 = vector.load %arg8[%c0_18, %c0_19] : memref<128x64xf32, #tpu.memory_space<vmem>>, vector<128x64xf32>
    %cst_20 = arith.constant dense<0.000000e+00> : vector<40x64xf32>
    %23 = tpu.matmul %21, %22, %cst_20 {dimension_numbers = #tpu.dot_dimension_numbers<[1], [0], [0], [1], [0, 0, 1, 1], [], []>} : vector<40x128xf32>, vector<128x64xf32>, vector<40x64xf32> -> vector<40x64xf32>
    %c0_21 = arith.constant 0 : index
    %c0_22 = arith.constant 0 : index
    %24 = vector.load %arg9[%c0_21, %c0_22] : memref<1x64xf32, #tpu.memory_space<vmem>>, vector<1x64xf32>
    %25 = vector.broadcast %24 : vector<1x64xf32> to vector<40x64xf32>
    %26 = arith.addf %23, %25 : vector<40x64xf32>
    %cst_23 = arith.constant 0.000000e+00 : f32
    %27 = vector.broadcast %cst_23 : f32 to vector<40x64xf32>
    %28 = arith.maximumf %26, %27 : vector<40x64xf32>
    %c0_24 = arith.constant 0 : index
    %c0_25 = arith.constant 0 : index
    %29 = vector.load %arg10[%c0_24, %c0_25] : memref<64x128xf32, #tpu.memory_space<vmem>>, vector<64x128xf32>
    %cst_26 = arith.constant dense<0.000000e+00> : vector<40x128xf32>
    %30 = tpu.matmul %28, %29, %cst_26 {dimension_numbers = #tpu.dot_dimension_numbers<[1], [0], [0], [1], [0, 0, 1, 1], [], []>} : vector<40x64xf32>, vector<64x128xf32>, vector<40x128xf32> -> vector<40x128xf32>
    %c0_27 = arith.constant 0 : index
    %c0_28 = arith.constant 0 : index
    %31 = vector.load %arg11[%c0_27, %c0_28] : memref<1x128xf32, #tpu.memory_space<vmem>>, vector<1x128xf32>
    %32 = vector.broadcast %31 : vector<1x128xf32> to vector<40x128xf32>
    %33 = arith.addf %30, %32 : vector<40x128xf32>
    %c0_29 = arith.constant 0 : index
    %c0_30 = arith.constant 0 : index
    %34 = vector.load %arg12[%c0_29, %c0_30] : memref<40x128xf32, #tpu.memory_space<vmem>>, vector<40x128xf32>
    tpu.vector_store %arg12[%c0_29, %c0_30], %33 {strides = array<i32>} : memref<40x128xf32, #tpu.memory_space<vmem>>, vector<40x128xf32>,
    return
  }
  func.func @transform_0(%arg0: i32) -> (i32, i32) {
    %c0_i32 = arith.constant 0 : i32
    %c0_i32_0 = arith.constant 0 : i32
    return %arg0, %c0_i32 : i32, i32
  }
  func.func @transform_1(%arg0: i32) -> (i32, i32) {
    %c0_i32 = arith.constant 0 : i32
    %c0_i32_0 = arith.constant 0 : i32
    %c0_i32_1 = arith.constant 0 : i32
    return %c0_i32, %c0_i32_0 : i32, i32
  }
  func.func @transform_2(%arg0: i32) -> (i32, i32) {
    %c0_i32 = arith.constant 0 : i32
    %c0_i32_0 = arith.constant 0 : i32
    %c0_i32_1 = arith.constant 0 : i32
    return %c0_i32, %c0_i32_0 : i32, i32
  }
  func.func @transform_3(%arg0: i32) -> (i32, i32) {
    %c0_i32 = arith.constant 0 : i32
    %c0_i32_0 = arith.constant 0 : i32
    %c0_i32_1 = arith.constant 0 : i32
    return %c0_i32, %c0_i32_0 : i32, i32
  }
  func.func @transform_4(%arg0: i32) -> (i32, i32) {
    %c0_i32 = arith.constant 0 : i32
    %c0_i32_0 = arith.constant 0 : i32
    %c0_i32_1 = arith.constant 0 : i32
    return %c0_i32, %c0_i32_0 : i32, i32
  }
  func.func @transform_5(%arg0: i32) -> (i32, i32) {
    %c0_i32 = arith.constant 0 : i32
    %c0_i32_0 = arith.constant 0 : i32
    %c0_i32_1 = arith.constant 0 : i32
    return %c0_i32, %c0_i32_0 : i32, i32
  }
  func.func @transform_6(%arg0: i32) -> (i32, i32) {
    %c0_i32 = arith.constant 0 : i32
    %c0_i32_0 = arith.constant 0 : i32
    %c0_i32_1 = arith.constant 0 : i32
    return %c0_i32, %c0_i32_0 : i32, i32
  }
  func.func @transform_7(%arg0: i32) -> (i32, i32) {
    %c0_i32 = arith.constant 0 : i32
    %c0_i32_0 = arith.constant 0 : i32
    %c0_i32_1 = arith.constant 0 : i32
    return %c0_i32, %c0_i32_0 : i32, i32
  }
  func.func @transform_8(%arg0: i32) -> (i32, i32) {
    %c0_i32 = arith.constant 0 : i32
    %c0_i32_0 = arith.constant 0 : i32
    %c0_i32_1 = arith.constant 0 : i32
    return %c0_i32, %c0_i32_0 : i32, i32
  }
  func.func @transform_9(%arg0: i32) -> (i32, i32) {
    %c0_i32 = arith.constant 0 : i32
    %c0_i32_0 = arith.constant 0 : i32
    %c0_i32_1 = arith.constant 0 : i32
    return %c0_i32, %c0_i32_0 : i32, i32
  }
  func.func @transform_10(%arg0: i32) -> (i32, i32) {
    %c0_i32 = arith.constant 0 : i32
    %c0_i32_0 = arith.constant 0 : i32
    %c0_i32_1 = arith.constant 0 : i32
    return %c0_i32, %c0_i32_0 : i32, i32
  }
  func.func @transform_11(%arg0: i32) -> (i32, i32) {
    %c0_i32 = arith.constant 0 : i32
    %c0_i32_0 = arith.constant 0 : i32
    return %arg0, %c0_i32 : i32, i32
  }
}

</mosaic_0001>

<bundles_post_ra>
// kernel: exam_mnist_forward.1
= control target key start
LH: loop header
LB: loop body
LE: loop exit
PB: predicated region body
PF: predicated region fallthrough
CT: control target
= control target key end

     0   :  { %16 = vsyncpa [#allocation3], 0  ;;  %s3676_s0 = inlined_call_operand.vmem [shape: f32[40,784], index: 0, kind: input, shape index: {}]   ;;  %s3677_s1 = inlined_call_operand.hbm [shape: f32[784,512], index: 1, kind: input, shape index: {}]   ;;  %s3678_s2 = inlined_call_operand.hbm [shape: f32[1,512], index: 2, kind: input, shape index: {}]   ;;  %s3679_s3 = inlined_call_operand.hbm [shape: f32[512,256], index: 3, kind: input, shape index: {}]   ;;  %s3680_s4 = inlined_call_operand.hbm [shape: f32[1,256], index: 4, kind: input, shape index: {}]   ;;  %s3681_s5 = inlined_call_operand.hbm [shape: f32[256,128], index: 5, kind: input, shape index: {}]   ;;  %s3682_s6 = inlined_call_operand.hbm [shape: f32[1,128], index: 6, kind: input, shape index: {}]   ;;  %s3683_s7 = inlined_call_operand.vmem [shape: f32[128,64], index: 7, kind: input, shape index: {}]   ;;  %s3684_s8 = inlined_call_operand.hbm [shape: f32[1,64], index: 8, kind: input, shape index: {}]   ;;  %s3685_s9 = inlined_call_operand.vmem [shape: f32[64,128], index: 9, kind: input, shape index: {}]   ;;  %s3686_s10 = inlined_call_operand.vmem [shape: f32[1,128], index: 10, kind: input, shape index: {}]   ;;  %s3687_s11 = inlined_call_operand.vmem [shape: f32[40,128], index: 11, kind: output, shape index: {}]  }
   0x1   :  { %17 = vsyncpa [#allocation5], 0 }
   0x2   :  { %18 = vsyncpa [#allocation8], 0 }
   0x3   :  { %19 = vsyncpa [#allocation11], 0  ;;  %s3144_s17 = smov [#allocation4]   ;;  %s3145_s19 = smov [#allocation7]  }
   0x4   :  { %s40_s18 = sshll.u32 %s3144_s17, 4  ;;  %s62_s20 = sshll.u32 %s3145_s19, 4  ;;  %s41_s18 = int_to_ptr.vmem [resolvable:$true] %s40_s18  ;;  %s63_s20 = int_to_ptr.vmem [resolvable:$true] %s62_s20 }
   0x5   :  { %s2982_s23 = scalar_lea.hbm %s3678_s2, 64 }
   0x6   :  { %p2983_p0 = scmp.ne.s32.totalorder %s3678_s2, %s2982_s23  ;;  %p2986_p1 = scmp.lt.u32.totalorder %s2982_s23, %s3678_s2 }
   0x8   :  { %p2988_p2 = pnand %p2986_p1, %p2983_p0 }
   0xa   :  { %2991 = shalt.err (!%p2988_p2)
}
   0xb   :  { %s2992_s28 = scalar_lea.vmem %s41_s18, 64  ;;  %p2997_p4 = scmp.lt.s32.totalorder %s41_s18, %s41_s18 }
   0xc   :  { %p2993_p3 = scmp.ne.s32.totalorder %s41_s18, %s2992_s28  ;;  %p2998_p5 = scmp.lt.s32.totalorder %s2992_s28, %s2992_s28 }
   0xe   :  { %p2999_p6 = por %p2998_p5, %p2997_p4 }
  0x10   :  { %p3000_p7 = pnand %p2999_p6, %p2993_p3 }
  0x12   :  { %3003 = shalt.err (!%p3000_p7)
}
  0x13   :  { %43 = dma.hbm_to_vmem [thread:$0]  %s3678_s2, 64, %s41_s18, [#allocation5]  }
  0x14   :  { %s3004_s14 = scalar_lea.hbm %s3680_s4, 32 }
  0x15   :  { %p3005_p8 = scmp.ne.s32.totalorder %s3680_s4, %s3004_s14  ;;  %p3008_p9 = scmp.lt.u32.totalorder %s3004_s14, %s3680_s4 }
  0x17   :  { %p3010_p10 = pnand %p3008_p9, %p3005_p8 }
  0x19   :  { %3013 = shalt.err (!%p3010_p10)
}
  0x1a   :  { %s3014_s21 = scalar_lea.vmem %s63_s20, 32  ;;  %p3019_p12 = scmp.lt.s32.totalorder %s63_s20, %s63_s20 }
  0x1b   :  { %p3015_p11 = scmp.ne.s32.totalorder %s63_s20, %s3014_s21  ;;  %p3020_p13 = scmp.lt.s32.totalorder %s3014_s21, %s3014_s21 }
  0x1d   :  { %p3021_p0 = por %p3020_p13, %p3019_p12 }
  0x1f   :  { %p3022_p1 = pnand %p3021_p0, %p3015_p11 }
  0x21   :  { %3025 = shalt.err (!%p3022_p1)
}
  0x22   :  { %65 = dma.hbm_to_vmem [thread:$0]  %s3680_s4, 32, %s63_s20, [#allocation8]  }
  0x23   :  { %s3146_s22 = smov [#allocation10]   ;;  %s3147_s24 = smov [#allocation2]  }
  0x24   :  { %s84_s23 = sshll.u32 %s3146_s22, 4  ;;  %s27_s25 = sshll.u32 %s3147_s24, 4  ;;  %s85_s23 = int_to_ptr.vmem [resolvable:$true] %s84_s23  ;;  %s3244_s25 = int_to_ptr.vmem [resolvable:$true] %s27_s25 }
  0x25   :  { %s3026_s28 = scalar_lea.hbm %s3682_s6, 16 }
  0x26   :  { %p3027_p2 = scmp.ne.s32.totalorder %s3682_s6, %s3026_s28  ;;  %p3030_p3 = scmp.lt.u32.totalorder %s3026_s28, %s3682_s6 }
  0x28   :  { %p3032_p4 = pnand %p3030_p3, %p3027_p2 }
  0x2a   :  { %3035 = shalt.err (!%p3032_p4)
}
  0x2b   :  { %s3036_s4 = scalar_lea.vmem %s85_s23, 16  ;;  %s3040_s20 = scalar_lea.vmem %s85_s23, 32 }
  0x2c   :  { %p3037_p5 = scmp.ne.s32.totalorder %s85_s23, %s3036_s4  ;;  %p3041_p6 = scmp.lt.s32.totalorder %s85_s23, %s85_s23 }
  0x2d   :  { %p3042_p7 = scmp.lt.s32.totalorder %s3040_s20, %s3036_s4 }
  0x2f   :  { %p3043_p8 = por %p3042_p7, %p3041_p6 }
  0x31   :  { %p3044_p9 = pnand %p3043_p8, %p3037_p5 }
  0x33   :  { %3047 = shalt.err (!%p3044_p9)
}
  0x34   :  { %87 = dma.hbm_to_vmem [thread:$0]  %s3682_s6, 16, %s85_s23, [#allocation11]  }
  0x35   :  { %s3048_s19 = scalar_lea.hbm %s3677_s1, 50176 }
  0x36   :  { %p3049_p10 = scmp.ne.s32.totalorder %s3677_s1, %s3048_s19  ;;  %p3052_p11 = scmp.lt.u32.totalorder %s3048_s19, %s3677_s1 }
  0x38   :  { %p3054_p12 = pnand %p3052_p11, %p3049_p10 }
  0x3a   :  { %3057 = shalt.err (!%p3054_p12)
}
  0x3b   :  { %s3058_s24 = scalar_lea.vmem %s3244_s25, 50176  ;;  %p3063_p0 = scmp.lt.s32.totalorder %s3244_s25, %s3244_s25 }
  0x3c   :  { %p3059_p13 = scmp.ne.s32.totalorder %s3244_s25, %s3058_s24  ;;  %p3064_p1 = scmp.lt.s32.totalorder %s3058_s24, %s3058_s24 }
  0x3e   :  { %p3065_p2 = por %p3064_p1, %p3063_p0 }
  0x40   :  { %p3066_p3 = pnand %p3065_p2, %p3059_p13 }
  0x42   :  { %3069 = shalt.err (!%p3066_p3)
}
  0x43   :  { %s3148_s6 = smov 512   ;;  %s3149_s23 = smov 32  }
  0x44   :  { %33 = dma.hbm_to_vmem [thread:$0]  %s3677_s1, 50176, %s3244_s25, [#allocation3], %s3148_s6, %s3148_s6, %s3149_s23  }
  0x45   :  { %s3150_s28 = smov [#allocation6]   ;;  %s3070_s13 = scalar_lea.hbm %s3679_s3, 16384 }
  0x46   :  { %s49_s29 = sshll.u32 %s3150_s28, 4  ;;  %p3071_p4 = scmp.ne.s32.totalorder %s3679_s3, %s3070_s13  ;;  %s50_s29 = int_to_ptr.vmem [resolvable:$true] %s49_s29 }
  0x47   :  { %p3074_p5 = scmp.lt.u32.totalorder %s3070_s13, %s3679_s3 }
  0x49   :  { %p3076_p6 = pnand %p3074_p5, %p3071_p4 }
  0x4b   :  { %3079 = shalt.err (!%p3076_p6)
}
  0x4c   :  { %s3080_s16 = scalar_lea.vmem %s50_s29, 16384  ;;  %p3085_p8 = scmp.lt.s32.totalorder %s50_s29, %s50_s29 }
  0x4d   :  { %p3081_p7 = scmp.ne.s32.totalorder %s50_s29, %s3080_s16  ;;  %p3086_p9 = scmp.lt.s32.totalorder %s3080_s16, %s3080_s16 }
  0x4f   :  { %p3087_p10 = por %p3086_p9, %p3085_p8 }
  0x51   :  { %p3088_p11 = pnand %p3087_p10, %p3081_p7 }
  0x53   :  { %3091 = shalt.err (!%p3088_p11)
}
  0x54   :  { %s3151_s1 = smov 256   ;;  %s3152_s25 = smov 16  }
  0x55   :  { %55 = dma.hbm_to_vmem [thread:$0]  %s3679_s3, 16384, %s50_s29, [#allocation5], %s3151_s1, %s3151_s1, %s3152_s25  }
  0x56   :  { %s3153_s21 = smov [#allocation9]   ;;  %s3092_s24 = scalar_lea.hbm %s3681_s5, 4096 }
  0x57   :  { %s71_s2 = sshll.u32 %s3153_s21, 4  ;;  %p3093_p12 = scmp.ne.s32.totalorder %s3681_s5, %s3092_s24  ;;  %s72_s2 = int_to_ptr.vmem [resolvable:$true] %s71_s2 }
  0x58   :  { %p3096_p13 = scmp.lt.u32.totalorder %s3092_s24, %s3681_s5 }
  0x5a   :  { %p3098_p0 = pnand %p3096_p13, %p3093_p12 }
  0x5c   :  { %3101 = shalt.err (!%p3098_p0)
}
  0x5d   :  { %s3102_s28 = scalar_lea.vmem %s72_s2, 4096  ;;  %p3107_p2 = scmp.lt.s32.totalorder %s72_s2, %s72_s2 }
  0x5e   :  { %p3103_p1 = scmp.ne.s32.totalorder %s72_s2, %s3102_s28  ;;  %p3108_p3 = scmp.lt.s32.totalorder %s3102_s28, %s3102_s28 }
  0x60   :  { %p3109_p4 = por %p3108_p3, %p3107_p2 }
  0x62   :  { %p3110_p5 = pnand %p3109_p4, %p3103_p1 }
  0x64   :  { %3113 = shalt.err (!%p3110_p5)
}
  0x65   :  { %s3154_s3 = smov 128   ;;  %s3155_s29 = smov 8  }
  0x66   :  { %77 = dma.hbm_to_vmem [thread:$0]  %s3681_s5, 4096, %s72_s2, [#allocation8], %s3154_s3, %s3154_s3, %s3155_s29  }
  0x67   :  { %s3156_s13 = smov [#allocation12]   ;;  %s3114_s15 = scalar_lea.hbm %s3684_s8, 16 }
  0x68   :  { %s96_s4 = sshll.u32 %s3156_s13, 4  ;;  %p3115_p6 = scmp.ne.s32.totalorder %s3684_s8, %s3114_s15  ;;  %s97_s4 = int_to_ptr.vmem [resolvable:$true] %s96_s4 }
  0x69   :  { %p3118_p7 = scmp.lt.u32.totalorder %s3114_s15, %s3684_s8 }
  0x6b   :  { %p3120_p8 = pnand %p3118_p7, %p3115_p6 }
  0x6d   :  { %3123 = shalt.err (!%p3120_p8)
}
  0x6e   :  { %s3124_s19 = scalar_lea.vmem %s97_s4, 16  ;;  %s3128_s5 = scalar_lea.vmem %s97_s4, 32 }
  0x6f   :  { %p3125_p9 = scmp.ne.s32.totalorder %s97_s4, %s3124_s19  ;;  %p3129_p10 = scmp.lt.s32.totalorder %s97_s4, %s97_s4 }
  0x70   :  { %p3130_p11 = scmp.lt.s32.totalorder %s3128_s5, %s3124_s19 }
  0x72   :  { %p3131_p12 = por %p3130_p11, %p3129_p10 }
  0x74   :  { %p3132_p13 = pnand %p3131_p12, %p3125_p9 }
  0x76   :  { %3135 = shalt.err (!%p3132_p13)
}
  0x77   :  { %99 = dma.hbm_to_vmem [thread:$0]  %s3684_s8, 16, %s97_s4, [#allocation11]  }
  0x78   :  { %3136 = dma.done.wait [#allocation3], 50176  }
  0x79   :  { %3137 = vsyncadd [#allocation3], 4294917120 }
  0x7a   :  { %3138 = dma.done.wait [#allocation5], 16448  }
  0x7b   :  { %3139 = vsyncadd [#allocation5], 4294950848 }
  0x7c   :  { %3140 = dma.done.wait [#allocation8], 4128  }
  0x7d   :  { %3141 = vsyncadd [#allocation8], 4294963168 }
  0x7e   :  { %3142 = dma.done.wait [#allocation11], 32  }
  0x7f   :  { %3143 = vsyncadd [#allocation11], 4294967264  ;;  %v3157_v0 = vmov 0.0   ;;  %v161_v1 = vld [vmem:[#allocation2 + $0x8] sm:$0xff]  ;;  %v160_v6 = vld [vmem:[#allocation2] sm:$0xff]  ;;  %vm574_vm0 = vcmask 130048  }
  0x80   :  { %939 = vmatprep.mubr.f32.mxu1 %v3157_v0  ;;  %v165_v2 = vld [vmem:[#allocation2 + $0x28] sm:$0xff]  ;;  %v164_v7 = vld [vmem:[#allocation2 + $0x20] sm:$0xff]  ;;  %v163_v15 = vld [vmem:[#allocation2 + $0x18] sm:$0xff]  ;;  %vm3159_vm1 = vmmov 0   ;;  %vm1977_vm2 = vcmask 523264  }
  0x81   :  { %v545_v3 = vld [vmem:[#allocation2 + $0xc08] sm:$0xff]  ;;  %v2273_v4 = vpack.c.bf16 %v165_v2, %v161_v1  ;;  %v2275_v9 = vpack.c.bf16 %v164_v7, %v160_v6  ;;  %v544_v10 = vld [vmem:[#allocation2 + $0xc00] sm:$0xff]  ;;  %v167_v16 = vld [vmem:[#allocation2 + $0x38] sm:$0xff] }
  0x82   :  { %v549_v5 = vld [vmem:[#allocation2 + $0xc28] sm:$0xff]  ;;  %v548_v11 = vld [vmem:[#allocation2 + $0xc20] sm:$0xff]  ;;  %v2469_v18 = vpack.c.bf16 %v167_v16, %v163_v15  ;;  %v131_v21 = vld [vmem:[%s3676_s0 + $0x30] sm:$0xff] }
  0x83   :  { %v2465_v8 = vpack.c.bf16 %v549_v5, %v545_v3  ;;  %v169_v12 = vld [vmem:[#allocation2 + $0x48] sm:$0xff]  ;;  %2274 = vmatprep.subr.bf16.mxu0 %v2273_v4  ;;  %v2467_v13 = vpack.c.bf16 %v548_v11, %v544_v10  ;;  %v168_v19 = vld [vmem:[#allocation2 + $0x40] sm:$0xff]  ;;  %v162_v23 = vld [vmem:[#allocation2 + $0x10] sm:$0xff] }
  0x84   :  { %v173_v14 = vld [vmem:[#allocation2 + $0x68] sm:$0xff]  ;;  %2276 = vmatpush1.bf16.msra.mxu0 %v2275_v9  ;;  %v172_v20 = vld [vmem:[#allocation2 + $0x60] sm:$0xff]  ;;  %v166_v24 = vld [vmem:[#allocation2 + $0x30] sm:$0xff] }
  0x85   :  { %2466 = vmatprep.subr.bf16.mxu1 %v2465_v8  ;;  %v2277_v17 = vpack.c.bf16 %v173_v14, %v169_v12  ;;  %v2279_v22 = vpack.c.bf16 %v172_v20, %v168_v19  ;;  %v177_v25 = vld [vmem:[#allocation2 + $0x88] sm:$0xff]  ;;  %v2471_v26 = vpack.c.bf16 %v166_v24, %v162_v23  ;;  %v171_v28 = vld [vmem:[#allocation2 + $0x58] sm:$0xff]  ;;  %v176_v32 = vld [vmem:[#allocation2 + $0x80] sm:$0xff] }
  0x86   :  { %2468 = vmatpush1.bf16.msra.mxu1 %v2467_v13  ;;  %v181_v27 = vld [vmem:[#allocation2 + $0xa8] sm:$0xff]  ;;  %v175_v29 = vld [vmem:[#allocation2 + $0x78] sm:$0xff]  ;;  %v180_v33 = vld [vmem:[#allocation2 + $0xa0] sm:$0xff] }
  0x87   :  { %2278 = vmatprep.subr.bf16.mxu0 %v2277_v17  ;;  %2470 = vmatprep.subr.bf16.mxu1 %v2469_v18  ;;  %v2281_v30 = vpack.c.bf16 %v181_v27, %v177_v25  ;;  %v2473_v31 = vpack.c.bf16 %v175_v29, %v171_v28  ;;  %v170_v34 = vld [vmem:[#allocation2 + $0x50] sm:$0xff]  ;;  %v2283_v35 = vpack.c.bf16 %v180_v33, %v176_v32  ;;  %v185_v37 = vld [vmem:[#allocation2 + $0xc8] sm:$0xff]  ;;  %v179_v41 = vld [vmem:[#allocation2 + $0x98] sm:$0xff] }
  0x88   :  { %2280 = vmatpush1.bf16.msra.mxu0 %v2279_v22  ;;  %v174_v36 = vld [vmem:[#allocation2 + $0x70] sm:$0xff]  ;;  %v189_v38 = vld [vmem:[#allocation2 + $0xe8] sm:$0xff]  ;;  %v183_v42 = vld [vmem:[#allocation2 + $0xb8] sm:$0xff] }
  0x89   :  { %2096 = vmatmul.mubr.msk.f32.vlgmr.msra.gmra.mrb[0].mxu1 %vm574_vm0, %v131_v21  ;;  %2282 = vmatprep.subr.bf16.mxu0 %v2281_v30  ;;  %v2475_v39 = vpack.c.bf16 %v174_v36, %v170_v34  ;;  %v2285_v40 = vpack.c.bf16 %v189_v38, %v185_v37  ;;  %v184_v43 = vld [vmem:[#allocation2 + $0xc0] sm:$0xff]  ;;  %v2477_v44 = vpack.c.bf16 %v183_v42, %v179_v41  ;;  %v178_v46 = vld [vmem:[#allocation2 + $0x90] sm:$0xff]  ;;  %v193_v48 = vld [vmem:[#allocation2 + $0x108] sm:$0xff] }
  0x8a   :  { %2472 = vmatpush1.bf16.msra.mxu1 %v2471_v26  ;;  %v188_v45 = vld [vmem:[#allocation2 + $0xe0] sm:$0xff]  ;;  %v182_v47 = vld [vmem:[#allocation2 + $0xb0] sm:$0xff]  ;;  %945 = vmatprep.mubr.f32.mxu1 %v3157_v0  ;;  %v197_v49 = vld [vmem:[#allocation2 + $0x128] sm:$0xff] }
  0x8b   :  { %2474 = vmatprep.subr.bf16.mxu1 %v2473_v31  ;;  %v187_v50 = vld [vmem:[#allocation2 + $0xd8] sm:$0xff]  ;;  %v2287_v51 = vpack.c.bf16 %v188_v45, %v184_v43  ;;  %v2479_v53 = vpack.c.bf16 %v182_v47, %v178_v46  ;;  %v2289_v54 = vpack.c.bf16 %v197_v49, %v193_v48  ;;  %v192_v55 = vld [vmem:[#allocation2 + $0x100] sm:$0xff]  ;;  %v186_v57 = vld [vmem:[#allocation2 + $0xd0] sm:$0xff] }
  0x8c   :  { %2284 = vmatpush1.bf16.msra.mxu0 %v2283_v35  ;;  %v191_v52 = vld [vmem:[#allocation2 + $0xf8] sm:$0xff]  ;;  %v196_v56 = vld [vmem:[#allocation2 + $0x120] sm:$0xff]  ;;  %v190_v59 = vld [vmem:[#allocation2 + $0xf0] sm:$0xff] }
  0x8d   :  { %2286 = vmatprep.subr.bf16.mxu0 %v2285_v40  ;;  %v2481_v58 = vpack.c.bf16 %v191_v52, %v187_v50  ;;  %v201_v60 = vld [vmem:[#allocation2 + $0x148] sm:$0xff]  ;;  %v195_v62 = vld [vmem:[#allocation2 + $0x118] sm:$0xff]  ;;  %v2291_v1 = vpack.c.bf16 %v196_v56, %v192_v55  ;;  %v2483_v2 = vpack.c.bf16 %v190_v59, %v186_v57  ;;  %v200_v4 = vld [vmem:[#allocation2 + $0x140] sm:$0xff] }
  0x8e   :  { %2476 = vmatpush1.bf16.msra.mxu1 %v2475_v39  ;;  %v205_v61 = vld [vmem:[#allocation2 + $0x168] sm:$0xff]  ;;  %v199_v63 = vld [vmem:[#allocation2 + $0x138] sm:$0xff]  ;;  %v204_v5 = vld [vmem:[#allocation2 + $0x160] sm:$0xff] }
  0x8f   :  { %2478 = vmatprep.subr.bf16.mxu1 %v2477_v44  ;;  %v2293_v3 = vpack.c.bf16 %v205_v61, %v201_v60  ;;  %v194_v6 = vld [vmem:[#allocation2 + $0x110] sm:$0xff]  ;;  %v2485_v7 = vpack.c.bf16 %v199_v63, %v195_v62  ;;  %v209_v9 = vld [vmem:[#allocation2 + $0x188] sm:$0xff]  ;;  %v203_v11 = vld [vmem:[#allocation2 + $0x158] sm:$0xff]  ;;  %v2295_v13 = vpack.c.bf16 %v204_v5, %v200_v4 }
  0x90   :  { %2288 = vmatpush1.bf16.msra.mxu0 %v2287_v51  ;;  %v198_v8 = vld [vmem:[#allocation2 + $0x130] sm:$0xff]  ;;  %v213_v10 = vld [vmem:[#allocation2 + $0x1a8] sm:$0xff]  ;;  %v207_v12 = vld [vmem:[#allocation2 + $0x178] sm:$0xff] }
  0x91   :  { %2290 = vmatprep.subr.bf16.mxu0 %v2289_v54  ;;  %v2487_v14 = vpack.c.bf16 %v198_v8, %v194_v6  ;;  %v2297_v15 = vpack.c.bf16 %v213_v10, %v209_v9  ;;  %v208_v16 = vld [vmem:[#allocation2 + $0x180] sm:$0xff]  ;;  %v202_v18 = vld [vmem:[#allocation2 + $0x150] sm:$0xff]  ;;  %v2489_v19 = vpack.c.bf16 %v207_v12, %v203_v11  ;;  %v217_v21 = vld [vmem:[#allocation2 + $0x1c8] sm:$0xff] }
  0x92   :  { %2480 = vmatpush1.bf16.msra.mxu1 %v2479_v53  ;;  %v212_v17 = vld [vmem:[#allocation2 + $0x1a0] sm:$0xff]  ;;  %v206_v20 = vld [vmem:[#allocation2 + $0x170] sm:$0xff]  ;;  %v221_v22 = vld [vmem:[#allocation2 + $0x1e8] sm:$0xff] }
  0x93   :  { %2482 = vmatprep.subr.bf16.mxu1 %v2481_v58  ;;  %v211_v23 = vld [vmem:[#allocation2 + $0x198] sm:$0xff]  ;;  %v2299_v25 = vpack.c.bf16 %v212_v17, %v208_v16  ;;  %v2491_v26 = vpack.c.bf16 %v206_v20, %v202_v18  ;;  %v2301_v27 = vpack.c.bf16 %v221_v22, %v217_v21  ;;  %v216_v28 = vld [vmem:[#allocation2 + $0x1c0] sm:$0xff]  ;;  %v210_v30 = vld [vmem:[#allocation2 + $0x190] sm:$0xff] }
  0x94   :  { %2292 = vmatpush1.bf16.msra.mxu0 %v2291_v1  ;;  %v215_v24 = vld [vmem:[#allocation2 + $0x1b8] sm:$0xff]  ;;  %v220_v29 = vld [vmem:[#allocation2 + $0x1e0] sm:$0xff]  ;;  %v214_v32 = vld [vmem:[#allocation2 + $0x1b0] sm:$0xff] }
  0x95   :  { %2294 = vmatprep.subr.bf16.mxu0 %v2293_v3  ;;  %v2493_v31 = vpack.c.bf16 %v215_v24, %v211_v23  ;;  %v225_v33 = vld [vmem:[#allocation2 + $0x208] sm:$0xff]  ;;  %v219_v35 = vld [vmem:[#allocation2 + $0x1d8] sm:$0xff]  ;;  %v2303_v37 = vpack.c.bf16 %v220_v29, %v216_v28  ;;  %v2495_v38 = vpack.c.bf16 %v214_v32, %v210_v30  ;;  %v224_v40 = vld [vmem:[#allocation2 + $0x200] sm:$0xff] }
  0x96   :  { %2484 = vmatpush1.bf16.msra.mxu1 %v2483_v2  ;;  %v229_v34 = vld [vmem:[#allocation2 + $0x228] sm:$0xff]  ;;  %v223_v36 = vld [vmem:[#allocation2 + $0x1f8] sm:$0xff]  ;;  %v228_v41 = vld [vmem:[#allocation2 + $0x220] sm:$0xff] }
  0x97   :  { %2486 = vmatprep.subr.bf16.mxu1 %v2485_v7  ;;  %v2305_v39 = vpack.c.bf16 %v229_v34, %v225_v33  ;;  %v218_v42 = vld [vmem:[#allocation2 + $0x1d0] sm:$0xff]  ;;  %v2497_v43 = vpack.c.bf16 %v223_v36, %v219_v35  ;;  %v233_v45 = vld [vmem:[#allocation2 + $0x248] sm:$0xff]  ;;  %v227_v47 = vld [vmem:[#allocation2 + $0x218] sm:$0xff]  ;;  %v2307_v49 = vpack.c.bf16 %v228_v41, %v224_v40 }
  0x98   :  { %2296 = vmatpush1.bf16.msra.mxu0 %v2295_v13  ;;  %v222_v44 = vld [vmem:[#allocation2 + $0x1f0] sm:$0xff]  ;;  %v237_v46 = vld [vmem:[#allocation2 + $0x268] sm:$0xff]  ;;  %v231_v48 = vld [vmem:[#allocation2 + $0x238] sm:$0xff] }
  0x99   :  { %2298 = vmatprep.subr.bf16.mxu0 %v2297_v15  ;;  %v2499_v50 = vpack.c.bf16 %v222_v44, %v218_v42  ;;  %v2309_v51 = vpack.c.bf16 %v237_v46, %v233_v45  ;;  %v232_v52 = vld [vmem:[#allocation2 + $0x240] sm:$0xff]  ;;  %v226_v54 = vld [vmem:[#allocation2 + $0x210] sm:$0xff]  ;;  %v2501_v55 = vpack.c.bf16 %v231_v48, %v227_v47  ;;  %v241_v57 = vld [vmem:[#allocation2 + $0x288] sm:$0xff] }
  0x9a   :  { %2488 = vmatpush1.bf16.msra.mxu1 %v2487_v14  ;;  %v236_v53 = vld [vmem:[#allocation2 + $0x260] sm:$0xff]  ;;  %v230_v56 = vld [vmem:[#allocation2 + $0x230] sm:$0xff]  ;;  %v245_v58 = vld [vmem:[#allocation2 + $0x2a8] sm:$0xff] }
  0x9b   :  { %2490 = vmatprep.subr.bf16.mxu1 %v2489_v19  ;;  %v235_v59 = vld [vmem:[#allocation2 + $0x258] sm:$0xff]  ;;  %v2311_v61 = vpack.c.bf16 %v236_v53, %v232_v52  ;;  %v240_v62 = vld [vmem:[#allocation2 + $0x280] sm:$0xff]  ;;  %v2503_v63 = vpack.c.bf16 %v230_v56, %v226_v54  ;;  %v2313_v1 = vpack.c.bf16 %v245_v58, %v241_v57  ;;  %v234_v3 = vld [vmem:[#allocation2 + $0x250] sm:$0xff] }
  0x9c   :  { %2300 = vmatpush1.bf16.msra.mxu0 %v2299_v25  ;;  %v239_v60 = vld [vmem:[#allocation2 + $0x278] sm:$0xff]  ;;  %v244_v2 = vld [vmem:[#allocation2 + $0x2a0] sm:$0xff]  ;;  %v138_v4 = vld [vmem:[%s3676_s0 + $0x68] sm:$0xff] }
  0x9d   :  { %2302 = vmatprep.subr.bf16.mxu0 %v2301_v27  ;;  %v2505_v5 = vpack.c.bf16 %v239_v60, %v235_v59  ;;  %v238_v6 = vld [vmem:[#allocation2 + $0x270] sm:$0xff]  ;;  %v249_v7 = vld [vmem:[#allocation2 + $0x2c8] sm:$0xff]  ;;  %2097 = vmatmul.mubr.msk.f32.gmra.mrb[2].mxu1 %vm574_vm0, %v138_v4  ;;  %v243_v9 = vld [vmem:[#allocation2 + $0x298] sm:$0xff]  ;;  %v2315_v11 = vpack.c.bf16 %v244_v2, %v240_v62 }
  0x9e   :  { %2492 = vmatpush1.bf16.msra.mxu1 %v2491_v26  ;;  %v253_v8 = vld [vmem:[#allocation2 + $0x2e8] sm:$0xff]  ;;  %v247_v10 = vld [vmem:[#allocation2 + $0x2b8] sm:$0xff]  ;;  %951 = vmatprep.mubr.f32.mxu1 %v3157_v0  ;;  %v145_v12 = vld [vmem:[%s3676_s0 + $0xa0] sm:$0xff]  ;;  %v2507_v13 = vpack.c.bf16 %v238_v6, %v234_v3 }
  0x9f   :  { %2494 = vmatprep.subr.bf16.mxu1 %v2493_v31  ;;  %v2317_v14 = vpack.c.bf16 %v253_v8, %v249_v7  ;;  %v248_v15 = vld [vmem:[#allocation2 + $0x2c0] sm:$0xff]  ;;  %v242_v17 = vld [vmem:[#allocation2 + $0x290] sm:$0xff]  ;;  %v2509_v18 = vpack.c.bf16 %v247_v10, %v243_v9  ;;  %v257_v20 = vld [vmem:[#allocation2 + $0x308] sm:$0xff] }
  0xa0   :  { %2304 = vmatpush1.bf16.msra.mxu0 %v2303_v37  ;;  %v252_v16 = vld [vmem:[#allocation2 + $0x2e0] sm:$0xff]  ;;  %v246_v19 = vld [vmem:[#allocation2 + $0x2b0] sm:$0xff]  ;;  %v261_v21 = vld [vmem:[#allocation2 + $0x328] sm:$0xff] }
  0xa1   :  { %2306 = vmatprep.subr.bf16.mxu0 %v2305_v39  ;;  %2098 = vmatmul.mubr.msk.f32.gmra.mrb[4].mxu1 %vm574_vm0, %v145_v12  ;;  %v251_v22 = vld [vmem:[#allocation2 + $0x2d8] sm:$0xff]  ;;  %v2319_v25 = vpack.c.bf16 %v252_v16, %v248_v15  ;;  %v126_v26 = vld [vmem:[%s3676_s0 + $0x8] sm:$0xff]  ;;  %v2511_v27 = vpack.c.bf16 %v246_v19, %v242_v17  ;;  %v2321_v28 = vpack.c.bf16 %v261_v21, %v257_v20  ;;  %v256_v29 = vld [vmem:[#allocation2 + $0x300] sm:$0xff] }
  0xa2   :  { %2496 = vmatpush1.bf16.msra.mxu1 %v2495_v38  ;;  %v255_v23 = vld [vmem:[#allocation2 + $0x2f8] sm:$0xff]  ;;  %957 = vmatprep.mubr.f32.mxu1 %v3157_v0  ;;  %v260_v30 = vld [vmem:[#allocation2 + $0x320] sm:$0xff]  ;;  %v250_v31 = vld [vmem:[#allocation2 + $0x2d0] sm:$0xff] }
  0xa3   :  { %2498 = vmatprep.subr.bf16.mxu1 %v2497_v43  ;;  %v152_v24 = vld [vmem:[%s3676_s0 + $0xd8] sm:$0xff]  ;;  %v2513_v32 = vpack.c.bf16 %v255_v23, %v251_v22  ;;  %v254_v33 = vld [vmem:[#allocation2 + $0x2f0] sm:$0xff]  ;;  %v265_v34 = vld [vmem:[#allocation2 + $0x348] sm:$0xff]  ;;  %654 = vmatprep.mubr.f32.mxu0 %v126_v26  ;;  %v2323_v39 = vpack.c.bf16 %v260_v30, %v256_v29 }
  0xa4   :  { %2308 = vmatpush1.bf16.msra.mxu0 %v2307_v49  ;;  %v269_v35 = vld [vmem:[#allocation2 + $0x368] sm:$0xff]  ;;  %v259_v36 = vld [vmem:[#allocation2 + $0x318] sm:$0xff]  ;;  %v159_v38 = vld [vmem:[%s3676_s0 + $0x110] sm:$0xff]  ;;  %v2515_v40 = vpack.c.bf16 %v254_v33, %v250_v31 }
  0xa5   :  { %2310 = vmatprep.subr.bf16.mxu0 %v2309_v51  ;;  %2099 = vmatmul.mubr.msk.f32.gmra.mrb[6].mxu1 %vm574_vm0, %v152_v24  ;;  %v263_v37 = vld [vmem:[#allocation2 + $0x338] sm:$0xff]  ;;  %v2325_v41 = vpack.c.bf16 %v269_v35, %v265_v34  ;;  %v264_v42 = vld [vmem:[#allocation2 + $0x340] sm:$0xff]  ;;  %v258_v44 = vld [vmem:[#allocation2 + $0x310] sm:$0xff] }
  0xa6   :  { %2500 = vmatpush1.bf16.msra.mxu1 %v2499_v50  ;;  %963 = vmatprep.mubr.f32.mxu1 %v3157_v0  ;;  %v268_v43 = vld [vmem:[#allocation2 + $0x360] sm:$0xff]  ;;  %v2517_v45 = vpack.c.bf16 %v263_v37, %v259_v36  ;;  %v262_v46 = vld [vmem:[#allocation2 + $0x330] sm:$0xff]  ;;  %v273_v47 = vld [vmem:[#allocation2 + $0x388] sm:$0xff] }
  0xa7   :  { %2502 = vmatprep.subr.bf16.mxu1 %v2501_v55  ;;  %v277_v48 = vld [vmem:[#allocation2 + $0x3a8] sm:$0xff]  ;;  %v267_v49 = vld [vmem:[#allocation2 + $0x358] sm:$0xff]  ;;  %v2327_v51 = vpack.c.bf16 %v268_v43, %v264_v42  ;;  %v2519_v52 = vpack.c.bf16 %v262_v46, %v258_v44  ;;  %v272_v54 = vld [vmem:[#allocation2 + $0x380] sm:$0xff] }
  0xa8   :  { %2312 = vmatpush1.bf16.msra.mxu0 %v2311_v61  ;;  %v271_v50 = vld [vmem:[#allocation2 + $0x378] sm:$0xff]  ;;  %v2329_v53 = vpack.c.bf16 %v277_v48, %v273_v47  ;;  %v276_v55 = vld [vmem:[#allocation2 + $0x3a0] sm:$0xff]  ;;  %v266_v56 = vld [vmem:[#allocation2 + $0x350] sm:$0xff] }
  0xa9   :  { %2314 = vmatprep.subr.bf16.mxu0 %v2313_v1  ;;  %2100 = vmatmul.mubr.msk.f32.gmra.mrb[8].mxu1 %vm574_vm0, %v159_v38  ;;  %v2521_v57 = vpack.c.bf16 %v271_v50, %v267_v49  ;;  %v270_v58 = vld [vmem:[#allocation2 + $0x370] sm:$0xff]  ;;  %v281_v59 = vld [vmem:[#allocation2 + $0x3c8] sm:$0xff]  ;;  %v275_v61 = vld [vmem:[#allocation2 + $0x398] sm:$0xff] }
  0xaa   :  { %2504 = vmatpush1.bf16.msra.mxu1 %v2503_v63  ;;  %1034 = vmatprep.mubr.f32.mxu1 %v126_v26  ;;  %v285_v60 = vld [vmem:[#allocation2 + $0x3e8] sm:$0xff]  ;;  %v279_v62 = vld [vmem:[#allocation2 + $0x3b8] sm:$0xff]  ;;  %v2331_v63 = vpack.c.bf16 %v276_v55, %v272_v54  ;;  %v2523_v1 = vpack.c.bf16 %v270_v58, %v266_v56  ;;  %v280_v3 = vld [vmem:[#allocation2 + $0x3c0] sm:$0xff] }
  0xab   :  { %2506 = vmatprep.subr.bf16.mxu1 %v2505_v5  ;;  %v2333_v2 = vpack.c.bf16 %v285_v60, %v281_v59  ;;  %v284_v4 = vld [vmem:[#allocation2 + $0x3e0] sm:$0xff]  ;;  %v274_v5 = vld [vmem:[#allocation2 + $0x390] sm:$0xff]  ;;  %v2525_v6 = vpack.c.bf16 %v279_v62, %v275_v61  ;;  %v289_v8 = vld [vmem:[#allocation2 + $0x408] sm:$0xff] }
  0xac   :  { %2316 = vmatpush1.bf16.msra.mxu0 %v2315_v11  ;;  %v278_v7 = vld [vmem:[#allocation2 + $0x3b0] sm:$0xff]  ;;  %v293_v9 = vld [vmem:[#allocation2 + $0x428] sm:$0xff]  ;;  %v283_v10 = vld [vmem:[#allocation2 + $0x3d8] sm:$0xff]  ;;  %v2335_v12 = vpack.c.bf16 %v284_v4, %v280_v3 }
  0xad   :  { %2318 = vmatprep.subr.bf16.mxu0 %v2317_v14  ;;  %v287_v11 = vld [vmem:[#allocation2 + $0x3f8] sm:$0xff]  ;;  %v2337_v14 = vpack.c.bf16 %v293_v9, %v289_v8  ;;  %v288_v15 = vld [vmem:[#allocation2 + $0x400] sm:$0xff]  ;;  %v282_v17 = vld [vmem:[#allocation2 + $0x3d0] sm:$0xff] }
  0xae   :  { %2508 = vmatpush1.bf16.msra.mxu1 %v2507_v13  ;;  %v2527_v13 = vpack.c.bf16 %v278_v7, %v274_v5  ;;  %v292_v16 = vld [vmem:[#allocation2 + $0x420] sm:$0xff]  ;;  %v286_v19 = vld [vmem:[#allocation2 + $0x3f0] sm:$0xff]  ;;  %v297_v20 = vld [vmem:[#allocation2 + $0x448] sm:$0xff] }
  0xaf   :  { %2510 = vmatprep.subr.bf16.mxu1 %v2509_v18  ;;  %v2529_v18 = vpack.c.bf16 %v287_v11, %v283_v10  ;;  %v301_v21 = vld [vmem:[#allocation2 + $0x468] sm:$0xff]  ;;  %v291_v22 = vld [vmem:[#allocation2 + $0x418] sm:$0xff]  ;;  %v125_v24 = vld [vmem:[%s3676_s0] sm:$0xff]  ;;  %v2531_v26 = vpack.c.bf16 %v286_v19, %v282_v17 }
  0xb0   :  { %2320 = vmatpush1.bf16.msra.mxu0 %v2319_v25  ;;  %v295_v23 = vld [vmem:[#allocation2 + $0x438] sm:$0xff]  ;;  %v2339_v25 = vpack.c.bf16 %v292_v16, %v288_v15  ;;  %v300_v29 = vld [vmem:[#allocation2 + $0x460] sm:$0xff]  ;;  %v290_v30 = vld [vmem:[#allocation2 + $0x410] sm:$0xff] }
  0xb1   :  { %2322 = vmatprep.subr.bf16.mxu0 %v2321_v28  ;;  %v296_v28 = vld [vmem:[#allocation2 + $0x440] sm:$0xff]  ;;  %v2533_v31 = vpack.c.bf16 %v295_v23, %v291_v22  ;;  %v305_v33 = vld [vmem:[#allocation2 + $0x488] sm:$0xff]  ;;  %v299_v35 = vld [vmem:[#allocation2 + $0x458] sm:$0xff] }
  0xb2   :  { %2512 = vmatpush1.bf16.msra.mxu1 %v2511_v27  ;;  %v2341_v27 = vpack.c.bf16 %v301_v21, %v297_v20  ;;  %v309_v34 = vld [vmem:[#allocation2 + $0x4a8] sm:$0xff]  ;;  %v303_v36 = vld [vmem:[#allocation2 + $0x478] sm:$0xff]  ;;  %v2343_v37 = vpack.c.bf16 %v300_v29, %v296_v28  ;;  %v298_v42 = vld [vmem:[#allocation2 + $0x450] sm:$0xff] }
  0xb3   :  { %2514 = vmatprep.subr.bf16.mxu1 %v2513_v32  ;;  %v294_v32 = vld [vmem:[#allocation2 + $0x430] sm:$0xff]  ;;  %v2537_v43 = vpack.c.bf16 %v303_v36, %v299_v35  ;;  %v317_v46 = vld [vmem:[#allocation2 + $0x4e8] sm:$0xff]  ;;  %v307_v47 = vld [vmem:[#allocation2 + $0x498] sm:$0xff] }
  0xb4   :  { %2324 = vmatpush1.bf16.msra.mxu0 %v2323_v39  ;;  %v2535_v38 = vpack.c.bf16 %v294_v32, %v290_v30  ;;  %v2345_v39 = vpack.c.bf16 %v309_v34, %v305_v33  ;;  %v302_v44 = vld [vmem:[#allocation2 + $0x470] sm:$0xff]  ;;  %v311_v48 = vld [vmem:[#allocation2 + $0x4b8] sm:$0xff]  ;;  %v325_v58 = vld [vmem:[#allocation2 + $0x528] sm:$0xff] }
  0xb5   :  { %2326 = vmatprep.subr.bf16.mxu0 %v2325_v41  ;;  %v308_v41 = vld [vmem:[#allocation2 + $0x4a0] sm:$0xff]  ;;  %v2539_v50 = vpack.c.bf16 %v302_v44, %v298_v42  ;;  %v306_v54 = vld [vmem:[#allocation2 + $0x490] sm:$0xff]  ;;  %v2541_v55 = vpack.c.bf16 %v311_v48, %v307_v47  ;;  %v315_v59 = vld [vmem:[#allocation2 + $0x4d8] sm:$0xff] }
  0xb6   :  { %2516 = vmatpush1.bf16.msra.mxu1 %v2515_v40  ;;  %v304_v40 = vld [vmem:[#allocation2 + $0x480] sm:$0xff]  ;;  %v310_v56 = vld [vmem:[#allocation2 + $0x4b0] sm:$0xff]  ;;  %v319_v60 = vld [vmem:[#allocation2 + $0x4f8] sm:$0xff] }
  0xb7   :  { %2518 = vmatprep.subr.bf16.mxu1 %v2517_v45  ;;  %v313_v45 = vld [vmem:[#allocation2 + $0x4c8] sm:$0xff]  ;;  %v2347_v49 = vpack.c.bf16 %v308_v41, %v304_v40  ;;  %v320_v62 = vld [vmem:[#allocation2 + $0x500] sm:$0xff]  ;;  %v314_v3 = vld [vmem:[#allocation2 + $0x4d0] sm:$0xff] }
  0xb8   :  { %2328 = vmatpush1.bf16.msra.mxu0 %v2327_v51  ;;  %v2349_v51 = vpack.c.bf16 %v317_v46, %v313_v45  ;;  %v318_v4 = vld [vmem:[#allocation2 + $0x4f0] sm:$0xff]  ;;  %v133_v5 = vld [vmem:[%s3676_s0 + $0x40] sm:$0xff]  ;;  %v329_v7 = vld [vmem:[#allocation2 + $0x548] sm:$0xff] }
  0xb9   :  { %2330 = vmatprep.subr.bf16.mxu0 %v2329_v53  ;;  %v316_v53 = vld [vmem:[#allocation2 + $0x4e0] sm:$0xff]  ;;  %v333_v8 = vld [vmem:[#allocation2 + $0x568] sm:$0xff]  ;;  %v132_v9 = vld [vmem:[%s3676_s0 + $0x38] sm:$0xff]  ;;  %v2547_v15 = vpack.c.bf16 %v318_v4, %v314_v3 }
  0xba   :  { %2520 = vmatpush1.bf16.msra.mxu1 %v2519_v52  ;;  %v312_v52 = vld [vmem:[#allocation2 + $0x4c0] sm:$0xff]  ;;  %v323_v10 = vld [vmem:[#allocation2 + $0x518] sm:$0xff]  ;;  %v2357_v16 = vpack.c.bf16 %v333_v8, %v329_v7  ;;  %v326_v19 = vld [vmem:[#allocation2 + $0x530] sm:$0xff] }
  0xbb   :  { %2522 = vmatprep.subr.bf16.mxu1 %v2521_v57  ;;  %v321_v57 = vld [vmem:[#allocation2 + $0x508] sm:$0xff]  ;;  %v2351_v61 = vpack.c.bf16 %v316_v53, %v312_v52  ;;  %v327_v11 = vld [vmem:[#allocation2 + $0x538] sm:$0xff]  ;;  %v332_v17 = vld [vmem:[#allocation2 + $0x560] sm:$0xff] }
  0xbc   :  { %2332 = vmatpush1.bf16.msra.mxu0 %v2331_v63  ;;  %v324_v63 = vld [vmem:[#allocation2 + $0x520] sm:$0xff]  ;;  %v2549_v20 = vpack.c.bf16 %v327_v11, %v323_v10  ;;  %v337_v21 = vld [vmem:[#allocation2 + $0x588] sm:$0xff]  ;;  %v139_v23 = vld [vmem:[%s3676_s0 + $0x70] sm:$0xff] }
  0xbd   :  { %2334 = vmatprep.subr.bf16.mxu0 %v2333_v2  ;;  %v2353_v2 = vpack.c.bf16 %v325_v58, %v321_v57  ;;  %v341_v22 = vld [vmem:[#allocation2 + $0x5a8] sm:$0xff]  ;;  %v336_v28 = vld [vmem:[#allocation2 + $0x580] sm:$0xff]  ;;  %v330_v32 = vld [vmem:[#allocation2 + $0x550] sm:$0xff] }
  0xbe   :  { %2524 = vmatpush1.bf16.msra.mxu1 %v2523_v1  ;;  %v2543_v1 = vpack.c.bf16 %v310_v56, %v306_v54  ;;  %v2361_v30 = vpack.c.bf16 %v341_v22, %v337_v21  ;;  %v146_v33 = vld [vmem:[%s3676_s0 + $0xa8] sm:$0xff]  ;;  %v334_v35 = vld [vmem:[#allocation2 + $0x570] sm:$0xff]  ;;  %v344_v42 = vld [vmem:[#allocation2 + $0x5c0] sm:$0xff] }
  0xbf   :  { %2526 = vmatprep.subr.bf16.mxu1 %v2525_v6  ;;  %v2545_v6 = vpack.c.bf16 %v319_v60, %v315_v59  ;;  %v345_v36 = vld [vmem:[#allocation2 + $0x5c8] sm:$0xff]  ;;  %v2555_v44 = vpack.c.bf16 %v334_v35, %v330_v32  ;;  %v348_v46 = vld [vmem:[#allocation2 + $0x5e0] sm:$0xff]  ;;  %v338_v47 = vld [vmem:[#allocation2 + $0x590] sm:$0xff] }
  0xc0   :  { %2336 = vmatpush1.bf16.msra.mxu0 %v2335_v12  ;;  %v2355_v12 = vpack.c.bf16 %v324_v63, %v320_v62  ;;  %v154_v40 = vld [vmem:[%s3676_s0 + $0xe8] sm:$0xff]  ;;  %v342_v48 = vld [vmem:[#allocation2 + $0x5b0] sm:$0xff]  ;;  %v128_v52 = vld [vmem:[%s3676_s0 + $0x18] sm:$0xff] }
  0xc1   :  { %2338 = vmatprep.subr.bf16.mxu0 %v2337_v14  ;;  %v140_v14 = vld [vmem:[%s3676_s0 + $0x78] sm:$0xff]  ;;  %v2559_v56 = vpack.c.bf16 %v342_v48, %v338_v47  ;;  %v352_v58 = vld [vmem:[#allocation2 + $0x600] sm:$0xff]  ;;  %v346_v60 = vld [vmem:[#allocation2 + $0x5d0] sm:$0xff] }
  0xc2   :  { %2528 = vmatpush1.bf16.msra.mxu1 %v2527_v13  ;;  %v328_v13 = vld [vmem:[#allocation2 + $0x540] sm:$0xff]  ;;  %v347_v53 = vld [vmem:[#allocation2 + $0x5d8] sm:$0xff]  ;;  %v350_v62 = vld [vmem:[#allocation2 + $0x5f0] sm:$0xff] }
  0xc3   :  { %2530 = vmatprep.subr.bf16.mxu1 %v2529_v18  ;;  %655 = vmatmul.mubr.f32.vlgmr.msra.gmra.mrb[0].mxu0 %v125_v24  ;;  %v322_v18 = vld [vmem:[#allocation2 + $0x510] sm:$0xff]  ;;  %v351_v54 = vld [vmem:[#allocation2 + $0x5f8] sm:$0xff]  ;;  %v356_v59 = vld [vmem:[#allocation2 + $0x620] sm:$0xff] }
  0xc4   :  { %2340 = vmatpush1.bf16.msra.mxu0 %v2339_v25  ;;  %660 = vmatprep.mubr.f32.mxu0 %v133_v5  ;;  %v335_v25 = vld [vmem:[#allocation2 + $0x578] sm:$0xff]  ;;  %v2551_v29 = vpack.c.bf16 %v326_v19, %v322_v18  ;;  %v361_v63 = vld [vmem:[#allocation2 + $0x648] sm:$0xff]  ;;  %v2371_v4 = vpack.c.bf16 %v356_v59, %v352_v58  ;;  %v360_v7 = vld [vmem:[#allocation2 + $0x640] sm:$0xff] }
  0xc5   :  { %2342 = vmatprep.subr.bf16.mxu0 %v2341_v27  ;;  %v2359_v27 = vpack.c.bf16 %v332_v17, %v328_v13  ;;  %v359_v3 = vld [vmem:[#allocation2 + $0x638] sm:$0xff]  ;;  %v364_v8 = vld [vmem:[#allocation2 + $0x660] sm:$0xff]  ;;  %v358_v11 = vld [vmem:[#allocation2 + $0x630] sm:$0xff] }
  0xc6   :  { %2532 = vmatpush1.bf16.msra.mxu1 %v2531_v26  ;;  %v147_v26 = vld [vmem:[%s3676_s0 + $0xb0] sm:$0xff]  ;;  %v373_v13 = vld [vmem:[#allocation2 + $0x6a8] sm:$0xff]  ;;  %v368_v19 = vld [vmem:[#allocation2 + $0x680] sm:$0xff] }
  0xc7   :  { %2534 = vmatprep.subr.bf16.mxu1 %v2533_v31  ;;  %661 = vmatmul.mubr.f32.gmra.mrb[2].mxu0 %v132_v9  ;;  %v340_v31 = vld [vmem:[#allocation2 + $0x5a0] sm:$0xff]  ;;  %v362_v21 = vld [vmem:[#allocation2 + $0x650] sm:$0xff]  ;;  %v393_v48 = vld [vmem:[#allocation2 + $0x748] sm:$0xff] }
  0xc8   :  { %2344 = vmatpush1.bf16.msra.mxu0 %v2343_v37  ;;  %666 = vmatprep.mubr.f32.mxu0 %v140_v14  ;;  %v349_v37 = vld [vmem:[#allocation2 + $0x5e8] sm:$0xff]  ;;  %v2363_v41 = vpack.c.bf16 %v340_v31, %v336_v28  ;;  %v376_v31 = vld [vmem:[#allocation2 + $0x6c0] sm:$0xff]  ;;  %v374_v35 = vld [vmem:[#allocation2 + $0x6b0] sm:$0xff] }
  0xc9   :  { %1035 = vmatmul.mubr.f32.vlgmr.msra.gmra.mrb[10].mxu1 %v125_v24  ;;  %2346 = vmatprep.subr.bf16.mxu0 %v2345_v39  ;;  %v331_v24 = vld [vmem:[#allocation2 + $0x558] sm:$0xff]  ;;  %v2365_v45 = vpack.c.bf16 %v349_v37, %v345_v36  ;;  %v380_v32 = vld [vmem:[#allocation2 + $0x6e0] sm:$0xff]  ;;  %v385_v36 = vld [vmem:[#allocation2 + $0x708] sm:$0xff] }
  0xca   :  { %2536 = vmatpush1.bf16.msra.mxu1 %v2535_v38  ;;  %1040 = vmatprep.mubr.f32.mxu1 %v133_v5  ;;  %v2553_v34 = vpack.c.bf16 %v335_v25, %v331_v24  ;;  %v339_v38 = vld [vmem:[#allocation2 + $0x598] sm:$0xff]  ;;  %v2563_v5 = vpack.c.bf16 %v350_v62, %v346_v60  ;;  %v377_v24 = vld [vmem:[#allocation2 + $0x6c8] sm:$0xff]  ;;  %v382_v47 = vld [vmem:[#allocation2 + $0x6f0] sm:$0xff] }
  0xcb   :  { %2538 = vmatprep.subr.bf16.mxu1 %v2537_v43  ;;  %667 = vmatmul.mubr.f32.gmra.mrb[4].mxu0 %v139_v23  ;;  %v343_v39 = vld [vmem:[#allocation2 + $0x5b8] sm:$0xff]  ;;  %v153_v43 = vld [vmem:[%s3676_s0 + $0xe0] sm:$0xff]  ;;  %v381_v25 = vld [vmem:[#allocation2 + $0x6e8] sm:$0xff] }
  0xcc   :  { %2348 = vmatpush1.bf16.msra.mxu0 %v2347_v49  ;;  %672 = vmatprep.mubr.f32.mxu0 %v147_v26  ;;  %v2557_v49 = vpack.c.bf16 %v343_v39, %v339_v38  ;;  %v389_v37 = vld [vmem:[#allocation2 + $0x728] sm:$0xff]  ;;  %v379_v38 = vld [vmem:[#allocation2 + $0x6d8] sm:$0xff]  ;;  %v390_v59 = vld [vmem:[#allocation2 + $0x730] sm:$0xff] }
  0xcd   :  { %2350 = vmatprep.subr.bf16.mxu0 %v2349_v51  ;;  %1041 = vmatmul.mubr.f32.gmra.mrb[12].mxu1 %v132_v9  ;;  %v357_v51 = vld [vmem:[#allocation2 + $0x628] sm:$0xff]  ;;  %v354_v9 = vld [vmem:[#allocation2 + $0x610] sm:$0xff]  ;;  %v383_v39 = vld [vmem:[#allocation2 + $0x6f8] sm:$0xff] }
  0xce   :  { %2540 = vmatpush1.bf16.msra.mxu1 %v2539_v50  ;;  %1046 = vmatprep.mubr.f32.mxu1 %v140_v14  ;;  %v353_v50 = vld [vmem:[#allocation2 + $0x608] sm:$0xff]  ;;  %v363_v14 = vld [vmem:[#allocation2 + $0x658] sm:$0xff]  ;;  %v2567_v17 = vpack.c.bf16 %v358_v11, %v354_v9 }
  0xcf   :  { %2542 = vmatprep.subr.bf16.mxu1 %v2541_v55  ;;  %673 = vmatmul.mubr.f32.gmra.mrb[6].mxu0 %v146_v33  ;;  %v2367_v55 = vpack.c.bf16 %v348_v46, %v344_v42  ;;  %v2369_v57 = vpack.c.bf16 %v357_v51, %v353_v50  ;;  %v2385_v42 = vpack.c.bf16 %v389_v37, %v385_v36  ;;  %v387_v50 = vld [vmem:[#allocation2 + $0x718] sm:$0xff]  ;;  %v401_v60 = vld [vmem:[#allocation2 + $0x788] sm:$0xff]  ;;  %v127_v37 = vld [vmem:[%s3676_s0 + $0x10] sm:$0xff] }
  0xd0   :  { %2352 = vmatpush1.bf16.msra.mxu0 %v2351_v61  ;;  %678 = vmatprep.mubr.f32.mxu0 %v154_v40  ;;  %v2561_v61 = vpack.c.bf16 %v351_v54, %v347_v53  ;;  %v2577_v46 = vpack.c.bf16 %v383_v39, %v379_v38  ;;  %v391_v51 = vld [vmem:[#allocation2 + $0x738] sm:$0xff]  ;;  %v409_v9 = vld [vmem:[#allocation2 + $0x7c8] sm:$0xff]  ;;  %v424_v39 = vld [vmem:[#allocation2 + $0x840] sm:$0xff] }
  0xd1   :  { %2354 = vmatprep.subr.bf16.mxu0 %v2353_v2  ;;  %1047 = vmatmul.mubr.f32.gmra.mrb[14].mxu1 %v139_v23  ;;  %v355_v2 = vld [vmem:[#allocation2 + $0x618] sm:$0xff]  ;;  %v366_v23 = vld [vmem:[#allocation2 + $0x670] sm:$0xff]  ;;  %v2581_v58 = vpack.c.bf16 %v391_v51, %v387_v50 }
  0xd2   :  { %2544 = vmatpush1.bf16.msra.mxu1 %v2543_v1  ;;  %1052 = vmatprep.mubr.f32.mxu1 %v147_v26  ;;  %v365_v1 = vld [vmem:[#allocation2 + $0x668] sm:$0xff]  ;;  %v2565_v10 = vpack.c.bf16 %v359_v3, %v355_v2  ;;  %v371_v26 = vld [vmem:[#allocation2 + $0x698] sm:$0xff] }
  0xd3   :  { %2546 = vmatprep.subr.bf16.mxu1 %v2545_v6  ;;  %679 = vmatmul.mubr.f32.gmra.mrb[8].mxu0 %v153_v43  ;;  %v2373_v6 = vpack.c.bf16 %v365_v1, %v361_v63  ;;  %v395_v62 = vld [vmem:[#allocation2 + $0x758] sm:$0xff] }
  0xd4   :  { %2356 = vmatpush1.bf16.msra.mxu0 %v2355_v12  ;;  %749 = vmatprep.mubr.f32.mxu0 %v128_v52  ;;  %v369_v12 = vld [vmem:[#allocation2 + $0x688] sm:$0xff]  ;;  %v399_v63 = vld [vmem:[#allocation2 + $0x778] sm:$0xff] }
  0xd5   :  { %2358 = vmatprep.subr.bf16.mxu0 %v2357_v16  ;;  %1053 = vmatmul.mubr.f32.gmra.mrb[16].mxu1 %v146_v33  ;;  %v2375_v16 = vpack.c.bf16 %v364_v8, %v360_v7  ;;  %v2377_v18 = vpack.c.bf16 %v373_v13, %v369_v12  ;;  %v370_v33 = vld [vmem:[#allocation2 + $0x690] sm:$0xff]  ;;  %v2585_v7 = vpack.c.bf16 %v399_v63, %v395_v62  ;;  %v403_v11 = vld [vmem:[#allocation2 + $0x798] sm:$0xff] }
  0xd6   :  { %2548 = vmatpush1.bf16.msra.mxu1 %v2547_v15  ;;  %1058 = vmatprep.mubr.f32.mxu1 %v154_v40  ;;  %v367_v15 = vld [vmem:[#allocation2 + $0x678] sm:$0xff]  ;;  %v2383_v40 = vpack.c.bf16 %v380_v32, %v376_v31  ;;  %v398_v8 = vld [vmem:[#allocation2 + $0x770] sm:$0xff] }
  0xd7   :  { %2550 = vmatprep.subr.bf16.mxu1 %v2549_v20  ;;  %v372_v20 = vld [vmem:[#allocation2 + $0x6a0] sm:$0xff]  ;;  %v2569_v22 = vpack.c.bf16 %v367_v15, %v363_v14  ;;  %v407_v12 = vld [vmem:[#allocation2 + $0x7b8] sm:$0xff]  ;;  %v414_v32 = vld [vmem:[#allocation2 + $0x7f0] sm:$0xff] }
  0xd8   :  { %2360 = vmatpush1.bf16.msra.mxu0 %v2359_v27  ;;  %v375_v27 = vld [vmem:[#allocation2 + $0x6b8] sm:$0xff]  ;;  %v2379_v28 = vpack.c.bf16 %v372_v20, %v368_v19  ;;  %v2589_v19 = vpack.c.bf16 %v407_v12, %v403_v11  ;;  %v406_v20 = vld [vmem:[#allocation2 + $0x7b0] sm:$0xff]  ;;  %v449_v11 = vld [vmem:[#allocation2 + $0x908] sm:$0xff] }
  0xd9   :  { %2362 = vmatprep.subr.bf16.mxu0 %v2361_v30  ;;  %1059 = vmatmul.mubr.f32.gmra.mrb[18].mxu1 %v153_v43  ;;  %v2381_v30 = vpack.c.bf16 %v381_v25, %v377_v24  ;;  %v384_v43 = vld [vmem:[#allocation2 + $0x700] sm:$0xff]  ;;  %v415_v24 = vld [vmem:[#allocation2 + $0x7f8] sm:$0xff]  ;;  %v453_v12 = vld [vmem:[#allocation2 + $0x928] sm:$0xff] }
  0xda   :  { %2552 = vmatpush1.bf16.msra.mxu1 %v2551_v29  ;;  %1129 = vmatprep.mubr.f32.mxu1 %v128_v52  ;;  %v2571_v29 = vpack.c.bf16 %v366_v23, %v362_v21  ;;  %v417_v21 = vld [vmem:[#allocation2 + $0x808] sm:$0xff]  ;;  %v411_v23 = vld [vmem:[#allocation2 + $0x7d8] sm:$0xff] }
  0xdb   :  { %2554 = vmatprep.subr.bf16.mxu1 %v2553_v34  ;;  %v2573_v34 = vpack.c.bf16 %v375_v27, %v371_v26  ;;  %v2593_v31 = vpack.c.bf16 %v415_v24, %v411_v23  ;;  %v423_v36 = vld [vmem:[#allocation2 + $0x838] sm:$0xff]  ;;  %v446_v24 = vld [vmem:[#allocation2 + $0x8f0] sm:$0xff] }
  0xdc   :  { %2364 = vmatpush1.bf16.msra.mxu0 %v2363_v41  ;;  %v2575_v41 = vpack.c.bf16 %v374_v35, %v370_v33  ;;  %v425_v33 = vld [vmem:[#allocation2 + $0x848] sm:$0xff]  ;;  %v419_v35 = vld [vmem:[#allocation2 + $0x818] sm:$0xff] }
  0xdd   :  { %2366 = vmatprep.subr.bf16.mxu0 %v2365_v45  ;;  %v378_v45 = vld [vmem:[#allocation2 + $0x6d0] sm:$0xff]  ;;  %v431_v50 = vld [vmem:[#allocation2 + $0x878] sm:$0xff] }
  0xde   :  { %2556 = vmatpush1.bf16.msra.mxu1 %v2555_v44  ;;  %v388_v44 = vld [vmem:[#allocation2 + $0x720] sm:$0xff]  ;;  %v2579_v53 = vpack.c.bf16 %v382_v47, %v378_v45  ;;  %v2597_v45 = vpack.c.bf16 %v423_v36, %v419_v35  ;;  %v433_v47 = vld [vmem:[#allocation2 + $0x888] sm:$0xff]  ;;  %v435_v62 = vld [vmem:[#allocation2 + $0x898] sm:$0xff] }
  0xdf   :  { %2558 = vmatprep.subr.bf16.mxu1 %v2557_v49  ;;  %v397_v49 = vld [vmem:[#allocation2 + $0x768] sm:$0xff]  ;;  %v2387_v52 = vpack.c.bf16 %v388_v44, %v384_v43  ;;  %v418_v43 = vld [vmem:[#allocation2 + $0x810] sm:$0xff]  ;;  %v439_v63 = vld [vmem:[#allocation2 + $0x8b8] sm:$0xff] }
  0xe0   :  { %2368 = vmatpush1.bf16.msra.mxu0 %v2367_v55  ;;  %v2389_v54 = vpack.c.bf16 %v397_v49, %v393_v48  ;;  %v392_v55 = vld [vmem:[#allocation2 + $0x740] sm:$0xff]  ;;  %v135_v44 = vld [vmem:[%s3676_s0 + $0x50] sm:$0xff]  ;;  %v437_v48 = vld [vmem:[#allocation2 + $0x8a8] sm:$0xff] }
  0xe1   :  { %2370 = vmatprep.subr.bf16.mxu0 %v2369_v57  ;;  %v386_v57 = vld [vmem:[#allocation2 + $0x710] sm:$0xff]  ;;  %v427_v49 = vld [vmem:[#allocation2 + $0x858] sm:$0xff]  ;;  %v460_v35 = vld [vmem:[#allocation2 + $0x960] sm:$0xff] }
  0xe2   :  { %2560 = vmatpush1.bf16.msra.mxu1 %v2559_v56  ;;  %v396_v56 = vld [vmem:[#allocation2 + $0x760] sm:$0xff]  ;;  %v2583_v2 = vpack.c.bf16 %v390_v59, %v386_v57  ;;  %v426_v57 = vld [vmem:[#allocation2 + $0x850] sm:$0xff] }
  0xe3   :  { %2562 = vmatprep.subr.bf16.mxu1 %v2561_v61  ;;  %v405_v61 = vld [vmem:[#allocation2 + $0x7a8] sm:$0xff]  ;;  %v2391_v1 = vpack.c.bf16 %v396_v56, %v392_v55  ;;  %v432_v55 = vld [vmem:[#allocation2 + $0x880] sm:$0xff]  ;;  %v430_v59 = vld [vmem:[#allocation2 + $0x870] sm:$0xff] }
  0xe4   :  { %2372 = vmatpush1.bf16.msra.mxu0 %v2371_v4  ;;  %v2393_v3 = vpack.c.bf16 %v405_v61, %v401_v60  ;;  %v400_v4 = vld [vmem:[#allocation2 + $0x780] sm:$0xff]  ;;  %v441_v60 = vld [vmem:[#allocation2 + $0x8c8] sm:$0xff]  ;;  %v450_v36 = vld [vmem:[#allocation2 + $0x910] sm:$0xff] }
  0xe5   :  { %2374 = vmatprep.subr.bf16.mxu0 %v2373_v6  ;;  %v394_v6 = vld [vmem:[#allocation2 + $0x750] sm:$0xff]  ;;  %v436_v56 = vld [vmem:[#allocation2 + $0x8a0] sm:$0xff]  ;;  %v445_v61 = vld [vmem:[#allocation2 + $0x8e8] sm:$0xff] }
  0xe6   :  { %2564 = vmatpush1.bf16.msra.mxu1 %v2563_v5  ;;  %v404_v5 = vld [vmem:[#allocation2 + $0x7a0] sm:$0xff]  ;;  %v2587_v14 = vpack.c.bf16 %v398_v8, %v394_v6  ;;  %v434_v8 = vld [vmem:[#allocation2 + $0x890] sm:$0xff] }
  0xe7   :  { %2566 = vmatprep.subr.bf16.mxu1 %v2565_v10  ;;  %v413_v10 = vld [vmem:[#allocation2 + $0x7e8] sm:$0xff]  ;;  %v2395_v13 = vpack.c.bf16 %v404_v5, %v400_v4  ;;  %v2603_v4 = vpack.c.bf16 %v430_v59, %v426_v57  ;;  %v2413_v5 = vpack.c.bf16 %v445_v61, %v441_v60  ;;  %v440_v6 = vld [vmem:[#allocation2 + $0x8c0] sm:$0xff]  ;;  %v466_v61 = vld [vmem:[#allocation2 + $0x990] sm:$0xff] }
  0xe8   :  { %2376 = vmatpush1.bf16.msra.mxu0 %v2375_v16  ;;  %v2397_v15 = vpack.c.bf16 %v413_v10, %v409_v9  ;;  %v408_v16 = vld [vmem:[#allocation2 + $0x7c0] sm:$0xff]  ;;  %v2605_v9 = vpack.c.bf16 %v439_v63, %v435_v62  ;;  %v438_v10 = vld [vmem:[#allocation2 + $0x8b0] sm:$0xff] }
  0xe9   :  { %2378 = vmatprep.subr.bf16.mxu0 %v2377_v18  ;;  %v402_v18 = vld [vmem:[#allocation2 + $0x790] sm:$0xff]  ;;  %v472_v59 = vld [vmem:[#allocation2 + $0x9c0] sm:$0xff] }
  0xea   :  { %2568 = vmatpush1.bf16.msra.mxu1 %v2567_v17  ;;  %v412_v17 = vld [vmem:[#allocation2 + $0x7e0] sm:$0xff]  ;;  %v2591_v26 = vpack.c.bf16 %v406_v20, %v402_v18  ;;  %v2607_v18 = vpack.c.bf16 %v438_v10, %v434_v8  ;;  %v470_v63 = vld [vmem:[#allocation2 + $0x9b0] sm:$0xff] }
  0xeb   :  { %2570 = vmatprep.subr.bf16.mxu1 %v2569_v22  ;;  %v421_v22 = vld [vmem:[#allocation2 + $0x828] sm:$0xff]  ;;  %v2399_v25 = vpack.c.bf16 %v412_v17, %v408_v16  ;;  %v148_v17 = vld [vmem:[%s3676_s0 + $0xb8] sm:$0xff]  ;;  %v448_v20 = vld [vmem:[#allocation2 + $0x900] sm:$0xff] }
  0xec   :  { %2380 = vmatpush1.bf16.msra.mxu0 %v2379_v28  ;;  %v2401_v27 = vpack.c.bf16 %v421_v22, %v417_v21  ;;  %v416_v28 = vld [vmem:[#allocation2 + $0x800] sm:$0xff]  ;;  %v442_v22 = vld [vmem:[#allocation2 + $0x8d0] sm:$0xff] }
  0xed   :  { %2382 = vmatprep.subr.bf16.mxu0 %v2381_v30  ;;  %v410_v30 = vld [vmem:[#allocation2 + $0x7d0] sm:$0xff]  ;;  %v452_v21 = vld [vmem:[#allocation2 + $0x920] sm:$0xff] }
  0xee   :  { %2572 = vmatpush1.bf16.msra.mxu1 %v2571_v29  ;;  %v420_v29 = vld [vmem:[#allocation2 + $0x820] sm:$0xff]  ;;  %v474_v10 = vld [vmem:[#allocation2 + $0x9d0] sm:$0xff] }
  0xef   :  { %2574 = vmatprep.subr.bf16.mxu1 %v2573_v34  ;;  %v429_v34 = vld [vmem:[#allocation2 + $0x868] sm:$0xff]  ;;  %v2403_v38 = vpack.c.bf16 %v420_v29, %v416_v28  ;;  %v455_v28 = vld [vmem:[#allocation2 + $0x938] sm:$0xff]  ;;  %v476_v60 = vld [vmem:[#allocation2 + $0x9e0] sm:$0xff] }
  0xf0   :  { %2384 = vmatpush1.bf16.msra.mxu0 %v2383_v40  ;;  %v2595_v40 = vpack.c.bf16 %v414_v32, %v410_v30  ;;  %v156_v29 = vld [vmem:[%s3676_s0 + $0xf8] sm:$0xff]  ;;  %v2419_v30 = vpack.c.bf16 %v452_v21, %v448_v20  ;;  %v2611_v32 = vpack.c.bf16 %v446_v24, %v442_v22  ;;  %v480_v8 = vld [vmem:[#allocation2 + $0xa00] sm:$0xff]  ;;  %v482_v22 = vld [vmem:[#allocation2 + $0xa10] sm:$0xff] }
  0xf1   :  { %2386 = vmatprep.subr.bf16.mxu0 %v2385_v42  ;;  %v428_v42 = vld [vmem:[#allocation2 + $0x860] sm:$0xff]  ;;  %v486_v24 = vld [vmem:[#allocation2 + $0xa30] sm:$0xff] }
  0xf2   :  { %2576 = vmatpush1.bf16.msra.mxu1 %v2575_v41  ;;  %v2405_v41 = vpack.c.bf16 %v429_v34, %v425_v33  ;;  %v2407_v51 = vpack.c.bf16 %v428_v42, %v424_v39  ;;  %v456_v34 = vld [vmem:[#allocation2 + $0x940] sm:$0xff]  ;;  %v465_v39 = vld [vmem:[#allocation2 + $0x988] sm:$0xff]  ;;  %v463_v42 = vld [vmem:[#allocation2 + $0x978] sm:$0xff] }
  0xf3   :  { %2578 = vmatprep.subr.bf16.mxu1 %v2577_v46  ;;  %v422_v46 = vld [vmem:[#allocation2 + $0x830] sm:$0xff]  ;;  %v488_v20 = vld [vmem:[#allocation2 + $0xa40] sm:$0xff] }
  0xf4   :  { %2388 = vmatpush1.bf16.msra.mxu0 %v2387_v52  ;;  %v134_v52 = vld [vmem:[%s3676_s0 + $0x48] sm:$0xff]  ;;  %v492_v21 = vld [vmem:[#allocation2 + $0xa60] sm:$0xff] }
  0xf5   :  { %2390 = vmatprep.subr.bf16.mxu0 %v2389_v54  ;;  %v2409_v54 = vpack.c.bf16 %v437_v48, %v433_v47  ;;  %v464_v47 = vld [vmem:[#allocation2 + $0x980] sm:$0xff] }
  0xf6   :  { %2580 = vmatpush1.bf16.msra.mxu1 %v2579_v53  ;;  %v2599_v53 = vpack.c.bf16 %v422_v46, %v418_v43  ;;  %v130_v43 = vld [vmem:[%s3676_s0 + $0x28] sm:$0xff]  ;;  %v468_v48 = vld [vmem:[#allocation2 + $0x9a0] sm:$0xff] }
  0xf7   :  { %2582 = vmatprep.subr.bf16.mxu1 %v2581_v58  ;;  %v2601_v58 = vpack.c.bf16 %v431_v50, %v427_v49  ;;  %v458_v49 = vld [vmem:[#allocation2 + $0x950] sm:$0xff] }
  0xf8   :  { %2392 = vmatpush1.bf16.msra.mxu0 %v2391_v1  ;;  %v142_v1 = vld [vmem:[%s3676_s0 + $0x88] sm:$0xff] }
  0xf9   :  { %2394 = vmatprep.subr.bf16.mxu0 %v2393_v3  ;;  %v141_v3 = vld [vmem:[%s3676_s0 + $0x80] sm:$0xff] }
  0xfa   :  { %2584 = vmatpush1.bf16.msra.mxu1 %v2583_v2  ;;  %v2411_v2 = vpack.c.bf16 %v436_v56, %v432_v55  ;;  %v471_v55 = vld [vmem:[#allocation2 + $0x9b8] sm:$0xff]  ;;  %v2427_v56 = vpack.c.bf16 %v468_v48, %v464_v47  ;;  %v502_v48 = vld [vmem:[#allocation2 + $0xab0] sm:$0xff] }
  0xfb   :  { %2586 = vmatprep.subr.bf16.mxu1 %v2585_v7  ;;  %v444_v7 = vld [vmem:[#allocation2 + $0x8e0] sm:$0xff] }
  0xfc   :  { %2396 = vmatpush1.bf16.msra.mxu0 %v2395_v13  ;;  %v443_v13 = vld [vmem:[#allocation2 + $0x8d8] sm:$0xff]  ;;  %v2415_v16 = vpack.c.bf16 %v444_v7, %v440_v6  ;;  %v2623_v6 = vpack.c.bf16 %v470_v63, %v466_v61  ;;  %v521_v61 = vld [vmem:[#allocation2 + $0xb48] sm:$0xff] }
  0xfd   :  { %2398 = vmatprep.subr.bf16.mxu0 %v2397_v15  ;;  %v149_v15 = vld [vmem:[%s3676_s0 + $0xc0] sm:$0xff]  ;;  %v515_v63 = vld [vmem:[#allocation2 + $0xb18] sm:$0xff] }
  0xfe   :  { %2588 = vmatpush1.bf16.msra.mxu1 %v2587_v14  ;;  %v447_v14 = vld [vmem:[#allocation2 + $0x8f8] sm:$0xff] }
  0xff   :  { %2590 = vmatprep.subr.bf16.mxu1 %v2589_v19  ;;  %v2417_v19 = vpack.c.bf16 %v453_v12, %v449_v11  ;;  %v2609_v23 = vpack.c.bf16 %v447_v14, %v443_v13  ;;  %v478_v12 = vld [vmem:[#allocation2 + $0x9f0] sm:$0xff]  ;;  %v489_v13 = vld [vmem:[#allocation2 + $0xa48] sm:$0xff] }
 0x100   :  { %2400 = vmatpush1.bf16.msra.mxu0 %v2399_v25  ;;  %v457_v25 = vld [vmem:[#allocation2 + $0x948] sm:$0xff] }
 0x101   :  { %2402 = vmatprep.subr.bf16.mxu0 %v2401_v27  ;;  %v451_v27 = vld [vmem:[#allocation2 + $0x918] sm:$0xff]  ;;  %v493_v14 = vld [vmem:[#allocation2 + $0xa68] sm:$0xff] }
 0x102   :  { %2592 = vmatpush1.bf16.msra.mxu1 %v2591_v26  ;;  %v461_v26 = vld [vmem:[#allocation2 + $0x968] sm:$0xff] }
 0x103   :  { %2594 = vmatprep.subr.bf16.mxu1 %v2593_v31  ;;  %750 = vmatmul.mubr.f32.vlgmr.msra.gmra.mrb[0].mxu0 %v127_v37  ;;  %v155_v31 = vld [vmem:[%s3676_s0 + $0xf0] sm:$0xff]  ;;  %v2421_v33 = vpack.c.bf16 %v461_v26, %v457_v25  ;;  %v497_v25 = vld [vmem:[#allocation2 + $0xa88] sm:$0xff] }
 0x104   :  { %2404 = vmatpush1.bf16.msra.mxu0 %v2403_v38  ;;  %755 = vmatprep.mubr.f32.mxu0 %v135_v44  ;;  %v454_v38 = vld [vmem:[#allocation2 + $0x930] sm:$0xff]  ;;  %v501_v26 = vld [vmem:[#allocation2 + $0xaa8] sm:$0xff] }
 0x105   :  { %2406 = vmatprep.subr.bf16.mxu0 %v2405_v41  ;;  %v459_v41 = vld [vmem:[#allocation2 + $0x958] sm:$0xff] }
 0x106   :  { %2596 = vmatpush1.bf16.msra.mxu1 %v2595_v40  ;;  %v469_v40 = vld [vmem:[#allocation2 + $0x9a8] sm:$0xff]  ;;  %v2617_v50 = vpack.c.bf16 %v463_v42, %v459_v41 }
 0x107   :  { %2598 = vmatprep.subr.bf16.mxu1 %v2597_v45  ;;  %756 = vmatmul.mubr.f32.gmra.mrb[2].mxu0 %v134_v52  ;;  %v2615_v45 = vpack.c.bf16 %v454_v38, %v450_v36  ;;  %v2425_v46 = vpack.c.bf16 %v469_v40, %v465_v39  ;;  %v494_v36 = vld [vmem:[#allocation2 + $0xa70] sm:$0xff]  ;;  %v509_v38 = vld [vmem:[#allocation2 + $0xae8] sm:$0xff]  ;;  %v499_v39 = vld [vmem:[#allocation2 + $0xa98] sm:$0xff] }
 0x108   :  { %2408 = vmatpush1.bf16.msra.mxu0 %v2407_v51  ;;  %761 = vmatprep.mubr.f32.mxu0 %v142_v1  ;;  %v462_v51 = vld [vmem:[#allocation2 + $0x970] sm:$0xff]  ;;  %v503_v40 = vld [vmem:[#allocation2 + $0xab8] sm:$0xff] }
 0x109   :  { %1130 = vmatmul.mubr.f32.vlgmr.msra.gmra.mrb[10].mxu1 %v127_v37  ;;  %2410 = vmatprep.subr.bf16.mxu0 %v2409_v54  ;;  %v2613_v37 = vpack.c.bf16 %v455_v28, %v451_v27  ;;  %v467_v54 = vld [vmem:[#allocation2 + $0x998] sm:$0xff]  ;;  %v2619_v57 = vpack.c.bf16 %v462_v51, %v458_v49  ;;  %v2637_v47 = vpack.c.bf16 %v503_v40, %v499_v39  ;;  %v513_v49 = vld [vmem:[#allocation2 + $0xb08] sm:$0xff]  ;;  %v538_v40 = vld [vmem:[#allocation2 + $0xbd0] sm:$0xff] }
 0x10a   :  { %2600 = vmatpush1.bf16.msra.mxu1 %v2599_v53  ;;  %1135 = vmatprep.mubr.f32.mxu1 %v135_v44  ;;  %v2423_v44 = vpack.c.bf16 %v460_v35, %v456_v34  ;;  %v477_v53 = vld [vmem:[#allocation2 + $0x9e8] sm:$0xff]  ;;  %v2621_v62 = vpack.c.bf16 %v471_v55, %v467_v54  ;;  %v491_v27 = vld [vmem:[#allocation2 + $0xa58] sm:$0xff]  ;;  %v490_v34 = vld [vmem:[#allocation2 + $0xa50] sm:$0xff] }
 0x10b   :  { %2602 = vmatprep.subr.bf16.mxu1 %v2601_v58  ;;  %762 = vmatmul.mubr.f32.gmra.mrb[4].mxu0 %v141_v3  ;;  %v495_v28 = vld [vmem:[#allocation2 + $0xa78] sm:$0xff]  ;;  %v2635_v42 = vpack.c.bf16 %v494_v36, %v490_v34  ;;  %v1371_v34 = vld [vmem:[#allocation6 + $0x8] sm:$0xff] }
 0x10c   :  { %2412 = vmatpush1.bf16.msra.mxu0 %v2411_v2  ;;  %767 = vmatprep.mubr.f32.mxu0 %v149_v15  ;;  %v485_v2 = vld [vmem:[#allocation2 + $0xa28] sm:$0xff]  ;;  %v2633_v35 = vpack.c.bf16 %v495_v28, %v491_v27  ;;  %v507_v51 = vld [vmem:[#allocation2 + $0xad8] sm:$0xff] }
 0x10d   :  { %1136 = vmatmul.mubr.f32.gmra.mrb[12].mxu1 %v134_v52  ;;  %2414 = vmatprep.subr.bf16.mxu0 %v2413_v5  ;;  %v473_v52 = vld [vmem:[#allocation2 + $0x9c8] sm:$0xff]  ;;  %v2431_v5 = vpack.c.bf16 %v476_v60, %v472_v59  ;;  %v510_v60 = vld [vmem:[#allocation2 + $0xaf0] sm:$0xff]  ;;  %v539_v36 = vld [vmem:[#allocation2 + $0xbd8] sm:$0xff] }
 0x10e   :  { %2604 = vmatpush1.bf16.msra.mxu1 %v2603_v4  ;;  %1141 = vmatprep.mubr.f32.mxu1 %v142_v1  ;;  %v2429_v58 = vpack.c.bf16 %v477_v53, %v473_v52  ;;  %v481_v1 = vld [vmem:[#allocation2 + $0xa08] sm:$0xff]  ;;  %v479_v4 = vld [vmem:[#allocation2 + $0x9f8] sm:$0xff] }
 0x10f   :  { %2606 = vmatprep.subr.bf16.mxu1 %v2605_v9  ;;  %768 = vmatmul.mubr.f32.gmra.mrb[6].mxu0 %v148_v17  ;;  %v2433_v7 = vpack.c.bf16 %v485_v2, %v481_v1  ;;  %v484_v9 = vld [vmem:[#allocation2 + $0xa20] sm:$0xff]  ;;  %v511_v52 = vld [vmem:[#allocation2 + $0xaf8] sm:$0xff] }
 0x110   :  { %2416 = vmatpush1.bf16.msra.mxu0 %v2415_v16  ;;  %773 = vmatprep.mubr.f32.mxu0 %v156_v29  ;;  %v487_v16 = vld [vmem:[#allocation2 + $0xa38] sm:$0xff]  ;;  %v2641_v59 = vpack.c.bf16 %v511_v52, %v507_v51 }
 0x111   :  { %1142 = vmatmul.mubr.f32.gmra.mrb[14].mxu1 %v141_v3  ;;  %2418 = vmatprep.subr.bf16.mxu0 %v2417_v19  ;;  %v475_v3 = vld [vmem:[#allocation2 + $0x9d8] sm:$0xff]  ;;  %v2437_v19 = vpack.c.bf16 %v493_v14, %v489_v13 }
 0x112   :  { %2608 = vmatpush1.bf16.msra.mxu1 %v2607_v18  ;;  %1147 = vmatprep.mubr.f32.mxu1 %v149_v15  ;;  %v2625_v11 = vpack.c.bf16 %v479_v4, %v475_v3  ;;  %v483_v15 = vld [vmem:[#allocation2 + $0xa18] sm:$0xff]  ;;  %v2627_v18 = vpack.c.bf16 %v478_v12, %v474_v10  ;;  %v529_v10 = vld [vmem:[#allocation2 + $0xb88] sm:$0xff] }
 0x113   :  { %2610 = vmatprep.subr.bf16.mxu1 %v2609_v23  ;;  %774 = vmatmul.mubr.f32.gmra.mrb[8].mxu0 %v155_v31  ;;  %v2629_v23 = vpack.c.bf16 %v487_v16, %v483_v15  ;;  %v519_v1 = vld [vmem:[#allocation2 + $0xb38] sm:$0xff] }
 0x114   :  { %2420 = vmatpush1.bf16.msra.mxu0 %v2419_v30  ;;  %844 = vmatprep.mubr.f32.mxu0 %v130_v43  ;;  %v2631_v30 = vpack.c.bf16 %v486_v24, %v482_v22  ;;  %v523_v12 = vld [vmem:[#allocation2 + $0xb58] sm:$0xff]  ;;  %v537_v22 = vld [vmem:[#allocation2 + $0xbc8] sm:$0xff] }
 0x115   :  { %1148 = vmatmul.mubr.f32.gmra.mrb[16].mxu1 %v148_v17  ;;  %2422 = vmatprep.subr.bf16.mxu0 %v2421_v33  ;;  %v2435_v17 = vpack.c.bf16 %v484_v9, %v480_v8  ;;  %v500_v33 = vld [vmem:[#allocation2 + $0xaa0] sm:$0xff]  ;;  %v2645_v8 = vpack.c.bf16 %v519_v1, %v515_v63  ;;  %v518_v9 = vld [vmem:[#allocation2 + $0xb30] sm:$0xff]  ;;  %v527_v13 = vld [vmem:[#allocation2 + $0xb78] sm:$0xff] }
 0x116   :  { %2612 = vmatpush1.bf16.msra.mxu1 %v2611_v32  ;;  %1153 = vmatprep.mubr.f32.mxu1 %v156_v29  ;;  %v2439_v29 = vpack.c.bf16 %v492_v21, %v488_v20  ;;  %v496_v32 = vld [vmem:[#allocation2 + $0xa80] sm:$0xff]  ;;  %v2649_v20 = vpack.c.bf16 %v527_v13, %v523_v12  ;;  %v526_v21 = vld [vmem:[#allocation2 + $0xb70] sm:$0xff]  ;;  %v531_v24 = vld [vmem:[#allocation2 + $0xb98] sm:$0xff] }
 0x117   :  { %2614 = vmatprep.subr.bf16.mxu1 %v2613_v37  ;;  %v505_v37 = vld [vmem:[#allocation2 + $0xac8] sm:$0xff]  ;;  %v2443_v41 = vpack.c.bf16 %v500_v33, %v496_v32  ;;  %v534_v33 = vld [vmem:[#allocation2 + $0xbb0] sm:$0xff]  ;;  %v144_v63 = vld [vmem:[%s3676_s0 + $0x98] sm:$0xff] }
 0x118   :  { %2424 = vmatpush1.bf16.msra.mxu0 %v2423_v44  ;;  %v504_v44 = vld [vmem:[#allocation2 + $0xac0] sm:$0xff]  ;;  %v1384_v13 = vld [vmem:[#allocation6 + $0x70] sm:$0xff] }
 0x119   :  { %1154 = vmatmul.mubr.f32.gmra.mrb[18].mxu1 %v155_v31  ;;  %2426 = vmatprep.subr.bf16.mxu0 %v2425_v46  ;;  %v2441_v31 = vpack.c.bf16 %v501_v26, %v497_v25  ;;  %v498_v46 = vld [vmem:[#allocation2 + $0xa90] sm:$0xff]  ;;  %v535_v25 = vld [vmem:[#allocation2 + $0xbb8] sm:$0xff]  ;;  %v1382_v12 = vld [vmem:[#allocation6 + $0x60] sm:$0xff] }
 0x11a   :  { %2616 = vmatpush1.bf16.msra.mxu1 %v2615_v45  ;;  %1224 = vmatprep.mubr.f32.mxu1 %v130_v43  ;;  %v2445_v43 = vpack.c.bf16 %v509_v38, %v505_v37  ;;  %v508_v45 = vld [vmem:[#allocation2 + $0xae0] sm:$0xff]  ;;  %v2639_v54 = vpack.c.bf16 %v502_v48, %v498_v46  ;;  %v2653_v32 = vpack.c.bf16 %v535_v25, %v531_v24  ;;  %v543_v37 = vld [vmem:[#allocation2 + $0xbf8] sm:$0xff]  ;;  %v1375_v46 = vld [vmem:[#allocation6 + $0x28] sm:$0xff] }
 0x11b   :  { %2618 = vmatprep.subr.bf16.mxu1 %v2617_v50  ;;  %v517_v50 = vld [vmem:[#allocation2 + $0xb28] sm:$0xff]  ;;  %v2447_v53 = vpack.c.bf16 %v508_v45, %v504_v44  ;;  %v2657_v44 = vpack.c.bf16 %v543_v37, %v539_v36  ;;  %v542_v45 = vld [vmem:[#allocation2 + $0xbf0] sm:$0xff]  ;;  %v547_v48 = vld [vmem:[#allocation2 + $0xc18] sm:$0xff] }
 0x11c   :  { %2428 = vmatpush1.bf16.msra.mxu0 %v2427_v56  ;;  %v2449_v55 = vpack.c.bf16 %v517_v50, %v513_v49  ;;  %v512_v56 = vld [vmem:[#allocation2 + $0xb00] sm:$0xff]  ;;  %v551_v49 = vld [vmem:[#allocation2 + $0xc38] sm:$0xff]  ;;  %v2659_v52 = vpack.c.bf16 %v542_v45, %v538_v40 }
 0x11d   :  { %2430 = vmatprep.subr.bf16.mxu0 %v2429_v58  ;;  %v506_v58 = vld [vmem:[#allocation2 + $0xad0] sm:$0xff]  ;;  %v129_v50 = vld [vmem:[%s3676_s0 + $0x20] sm:$0xff] }
 0x11e   :  { %2620 = vmatpush1.bf16.msra.mxu1 %v2619_v57  ;;  %v516_v57 = vld [vmem:[#allocation2 + $0xb20] sm:$0xff]  ;;  %v2643_v3 = vpack.c.bf16 %v510_v60, %v506_v58  ;;  %v136_v60 = vld [vmem:[%s3676_s0 + $0x58] sm:$0xff] }
 0x11f   :  { %2622 = vmatprep.subr.bf16.mxu1 %v2621_v62  ;;  %v525_v62 = vld [vmem:[#allocation2 + $0xb68] sm:$0xff]  ;;  %v2451_v2 = vpack.c.bf16 %v516_v57, %v512_v56  ;;  %v546_v56 = vld [vmem:[#allocation2 + $0xc10] sm:$0xff]  ;;  %v1393_v24 = vld [vmem:[#allocation6 + $0xb8] sm:$0xff] }
 0x120   :  { %2432 = vmatpush1.bf16.msra.mxu0 %v2431_v5  ;;  %v2453_v4 = vpack.c.bf16 %v525_v62, %v521_v61  ;;  %v520_v5 = vld [vmem:[#allocation2 + $0xb40] sm:$0xff]  ;;  %v550_v57 = vld [vmem:[#allocation2 + $0xc30] sm:$0xff] }
 0x121   :  { %2434 = vmatprep.subr.bf16.mxu0 %v2433_v7  ;;  %v514_v7 = vld [vmem:[#allocation2 + $0xb10] sm:$0xff]  ;;  %v1374_v58 = vld [vmem:[#allocation6 + $0x20] sm:$0xff]  ;;  %v1381_v62 = vld [vmem:[#allocation6 + $0x58] sm:$0xff]  ;;  %v2663_v1 = vpack.c.bf16 %v550_v57, %v546_v56 }
 0x122   :  { %2624 = vmatpush1.bf16.msra.mxu1 %v2623_v6  ;;  %v524_v6 = vld [vmem:[#allocation2 + $0xb60] sm:$0xff]  ;;  %v2647_v15 = vpack.c.bf16 %v518_v9, %v514_v7  ;;  %v1379_v61 = vld [vmem:[#allocation6 + $0x48] sm:$0xff]  ;;  %v1408_v56 = vld [vmem:[#allocation6 + $0x130] sm:$0xff] }
 0x123   :  { %2626 = vmatprep.subr.bf16.mxu1 %v2625_v11  ;;  %v533_v11 = vld [vmem:[#allocation2 + $0xba8] sm:$0xff]  ;;  %v2455_v14 = vpack.c.bf16 %v524_v6, %v520_v5  ;;  %v1380_v5 = vld [vmem:[#allocation6 + $0x50] sm:$0xff]  ;;  %v1401_v36 = vld [vmem:[#allocation6 + $0xf8] sm:$0xff] }
 0x124   :  { %2436 = vmatpush1.bf16.msra.mxu0 %v2435_v17  ;;  %v2457_v16 = vpack.c.bf16 %v533_v11, %v529_v10  ;;  %v528_v17 = vld [vmem:[#allocation2 + $0xb80] sm:$0xff]  ;;  %v143_v6 = vld [vmem:[%s3676_s0 + $0x90] sm:$0xff] }
 0x125   :  { %2438 = vmatprep.subr.bf16.mxu0 %v2437_v19  ;;  %v522_v19 = vld [vmem:[#allocation2 + $0xb50] sm:$0xff]  ;;  %v1398_v40 = vld [vmem:[#allocation6 + $0xe0] sm:$0xff]  ;;  %v1405_v45 = vld [vmem:[#allocation6 + $0x118] sm:$0xff] }
 0x126   :  { %2628 = vmatpush1.bf16.msra.mxu1 %v2627_v18  ;;  %v532_v18 = vld [vmem:[#allocation2 + $0xba0] sm:$0xff]  ;;  %v2651_v27 = vpack.c.bf16 %v526_v21, %v522_v19  ;;  %v1383_v7 = vld [vmem:[#allocation6 + $0x68] sm:$0xff]  ;;  %v1388_v21 = vld [vmem:[#allocation6 + $0x90] sm:$0xff] }
 0x127   :  { %2630 = vmatprep.subr.bf16.mxu1 %v2629_v23  ;;  %v541_v23 = vld [vmem:[#allocation2 + $0xbe8] sm:$0xff]  ;;  %v2459_v26 = vpack.c.bf16 %v532_v18, %v528_v17  ;;  %v151_v9 = vld [vmem:[%s3676_s0 + $0xd0] sm:$0xff]  ;;  %v2679_v18 = vpack.c.bf16 %v1384_v13, %v1382_v12  ;;  %v2979_v57 = vld [vmem:[%s3676_s0 + $0xa0] sm:$0xff] }
 0x128   :  { %2440 = vmatpush1.bf16.msra.mxu0 %v2439_v29  ;;  %v2461_v28 = vpack.c.bf16 %v541_v23, %v537_v22  ;;  %v536_v29 = vld [vmem:[#allocation2 + $0xbc0] sm:$0xff]  ;;  %v158_v17 = vld [vmem:[%s3676_s0 + $0x108] sm:$0xff] }
 0x129   :  { %2442 = vmatprep.subr.bf16.mxu0 %v2441_v31  ;;  %v530_v31 = vld [vmem:[#allocation2 + $0xb90] sm:$0xff]  ;;  %v157_v22 = vld [vmem:[%s3676_s0 + $0x100] sm:$0xff] }
 0x12a   :  { %2632 = vmatpush1.bf16.msra.mxu1 %v2631_v30  ;;  %v540_v30 = vld [vmem:[#allocation2 + $0xbe0] sm:$0xff]  ;;  %v2655_v39 = vpack.c.bf16 %v534_v33, %v530_v31  ;;  %v1391_v23 = vld [vmem:[#allocation6 + $0xa8] sm:$0xff] }
 0x12b   :  { %2634 = vmatprep.subr.bf16.mxu1 %v2633_v35  ;;  %v1373_v35 = vld [vmem:[#allocation6 + $0x18] sm:$0xff]  ;;  %v2463_v38 = vpack.c.bf16 %v540_v30, %v536_v29  ;;  %v1395_v29 = vld [vmem:[#allocation6 + $0xc8] sm:$0xff]  ;;  %v1394_v33 = vld [vmem:[#allocation6 + $0xc0] sm:$0xff] }
 0x12c   :  { %2444 = vmatpush1.bf16.msra.mxu0 %v2443_v41  ;;  %v2665_v41 = vpack.c.bf16 %v1373_v35, %v1371_v34  ;;  %v1397_v30 = vld [vmem:[#allocation6 + $0xd8] sm:$0xff]  ;;  %v1396_v34 = vld [vmem:[#allocation6 + $0xd0] sm:$0xff]  ;;  %v1399_v35 = vld [vmem:[#allocation6 + $0xe8] sm:$0xff] }
 0x12d   :  { %2446 = vmatprep.subr.bf16.mxu0 %v2445_v43  ;;  %v1372_v43 = vld [vmem:[#allocation6 + $0x10] sm:$0xff]  ;;  %v2691_v37 = vpack.c.bf16 %v1396_v34, %v1394_v33  ;;  %v1418_v13 = vld [vmem:[#allocation6 + $0x180] sm:$0xff] }
 0x12e   :  { %2636 = vmatpush1.bf16.msra.mxu1 %v2635_v42  ;;  %v1370_v42 = vld [vmem:[#allocation6] sm:$0xff]  ;;  %v1428_v34 = vld [vmem:[#allocation6 + $0x1d0] sm:$0xff] }
 0x12f   :  { %2638 = vmatprep.subr.bf16.mxu1 %v2637_v47  ;;  %v1377_v47 = vld [vmem:[#allocation6 + $0x38] sm:$0xff]  ;;  %v2667_v51 = vpack.c.bf16 %v1372_v43, %v1370_v42  ;;  %v2977_v42 = vld [vmem:[%s3676_s0 + $0x30] sm:$0xff]  ;;  %v1426_v33 = vld [vmem:[#allocation6 + $0x1c0] sm:$0xff] }
 0x130   :  { %2448 = vmatpush1.bf16.msra.mxu0 %v2447_v53  ;;  %v137_v53 = vld [vmem:[%s3676_s0 + $0x60] sm:$0xff] }
 0x131   :  { %2450 = vmatprep.subr.bf16.mxu0 %v2449_v55  ;;  %v2661_v55 = vpack.c.bf16 %v551_v49, %v547_v48  ;;  %v1402_v48 = vld [vmem:[#allocation6 + $0x100] sm:$0xff]  ;;  %v1404_v49 = vld [vmem:[#allocation6 + $0x110] sm:$0xff] }
 0x132   :  { %2640 = vmatpush1.bf16.msra.mxu1 %v2639_v54  ;;  %v2669_v54 = vpack.c.bf16 %v1377_v47, %v1375_v46 }
 0x133   :  { %2642 = vmatprep.subr.bf16.mxu1 %v2641_v59  ;;  %v1376_v59 = vld [vmem:[#allocation6 + $0x30] sm:$0xff] }
 0x134   :  { %2452 = vmatpush1.bf16.msra.mxu0 %v2451_v2  ;;  %v2671_v2 = vpack.c.bf16 %v1376_v59, %v1374_v58  ;;  %v1411_v58 = vld [vmem:[#allocation6 + $0x148] sm:$0xff]  ;;  %v1413_v59 = vld [vmem:[#allocation6 + $0x158] sm:$0xff] }
 0x135   :  { %2454 = vmatprep.subr.bf16.mxu0 %v2453_v4  ;;  %v1378_v4 = vld [vmem:[#allocation6 + $0x40] sm:$0xff] }
 0x136   :  { %2644 = vmatpush1.bf16.msra.mxu1 %v2643_v3  ;;  %v2673_v3 = vpack.c.bf16 %v1381_v62, %v1379_v61  ;;  %v2675_v10 = vpack.c.bf16 %v1380_v5, %v1378_v4  ;;  %v2705_v61 = vpack.c.bf16 %v1413_v59, %v1411_v58  ;;  %v1410_v62 = vld [vmem:[#allocation6 + $0x140] sm:$0xff]  ;;  %v1731_v59 = vld [vmem:[#allocation9 + $0xa8] sm:$0xff] }
 0x137   :  { %2646 = vmatprep.subr.bf16.mxu1 %v2645_v8  ;;  %v1385_v8 = vld [vmem:[#allocation6 + $0x78] sm:$0xff]  ;;  %v1730_v58 = vld [vmem:[#allocation9 + $0xa0] sm:$0xff] }
 0x138   :  { %2456 = vmatpush1.bf16.msra.mxu0 %v2455_v14  ;;  %v2677_v11 = vpack.c.bf16 %v1385_v8, %v1383_v7  ;;  %v150_v14 = vld [vmem:[%s3676_s0 + $0xc8] sm:$0xff]  ;;  %v1416_v7 = vld [vmem:[#allocation6 + $0x170] sm:$0xff] }
 0x139   :  { %2458 = vmatprep.subr.bf16.mxu0 %v2457_v16  ;;  %v1389_v16 = vld [vmem:[#allocation6 + $0x98] sm:$0xff]  ;;  %v2981_v8 = vld [vmem:[%s3676_s0 + $0x110] sm:$0xff] }
 0x13a   :  { %2648 = vmatpush1.bf16.msra.mxu1 %v2647_v15  ;;  %v1387_v15 = vld [vmem:[#allocation6 + $0x88] sm:$0xff] }
 0x13b   :  { %2650 = vmatprep.subr.bf16.mxu1 %v2649_v20  ;;  %v2681_v19 = vpack.c.bf16 %v1389_v16, %v1387_v15  ;;  %v1386_v20 = vld [vmem:[#allocation6 + $0x80] sm:$0xff]  ;;  %v1423_v15 = vld [vmem:[#allocation6 + $0x1a8] sm:$0xff]  ;;  %v1425_v16 = vld [vmem:[#allocation6 + $0x1b8] sm:$0xff] }
 0x13c   :  { %2460 = vmatpush1.bf16.msra.mxu0 %v2459_v26  ;;  %v2683_v25 = vpack.c.bf16 %v1388_v21, %v1386_v20  ;;  %v2685_v26 = vpack.c.bf16 %v1393_v24, %v1391_v23  ;;  %v1424_v20 = vld [vmem:[#allocation6 + $0x1b0] sm:$0xff] }
 0x13d   :  { %2462 = vmatprep.subr.bf16.mxu0 %v2461_v28  ;;  %v1392_v28 = vld [vmem:[#allocation6 + $0xb0] sm:$0xff] }
 0x13e   :  { %2652 = vmatpush1.bf16.msra.mxu1 %v2651_v27  ;;  %v1390_v27 = vld [vmem:[#allocation6 + $0xa0] sm:$0xff] }
 0x13f   :  { %2654 = vmatprep.subr.bf16.mxu1 %v2653_v32  ;;  %v2687_v31 = vpack.c.bf16 %v1392_v28, %v1390_v27  ;;  %v2689_v32 = vpack.c.bf16 %v1397_v30, %v1395_v29  ;;  %v1427_v30 = vld [vmem:[#allocation6 + $0x1c8] sm:$0xff] }
 0x140   :  { %2464 = vmatpush1.bf16.msra.mxu0 %v2463_v38 }
 0x141   :  { %2666 = vmatprep.subr.bf16.mxu0 %v2665_v41  ;;  %v1400_v41 = vld [vmem:[#allocation6 + $0xf0] sm:$0xff] }
 0x142   :  { %2656 = vmatpush1.bf16.msra.mxu1 %v2655_v39  ;;  %v2693_v39 = vpack.c.bf16 %v1401_v36, %v1399_v35  ;;  %v2695_v46 = vpack.c.bf16 %v1400_v41, %v1398_v40  ;;  %v2723_v35 = vpack.c.bf16 %v1428_v34, %v1426_v33  ;;  %v1431_v36 = vld [vmem:[#allocation6 + $0x1e8] sm:$0xff]  ;;  %v1430_v40 = vld [vmem:[#allocation6 + $0x1e0] sm:$0xff]  ;;  %v1432_v41 = vld [vmem:[#allocation6 + $0x1f0] sm:$0xff] }
 0x143   :  { %2658 = vmatprep.subr.bf16.mxu1 %v2657_v44  ;;  %845 = vmatmul.mubr.f32.vlgmr.msra.gmra.mrb[0].mxu0 %v129_v50  ;;  %v1403_v44 = vld [vmem:[#allocation6 + $0x108] sm:$0xff]  ;;  %v3474_v34 = vld [vmem:[#allocation4] sm:$0xf] }
 0x144   :  { %850 = vmatprep.mubr.f32.mxu0 %v137_v53  ;;  %2668 = vmatpush1.bf16.msra.mxu0 %v2667_v51  ;;  %v2697_v47 = vpack.c.bf16 %v1405_v45, %v1403_v44  ;;  %v1407_v51 = vld [vmem:[#allocation6 + $0x128] sm:$0xff]  ;;  %v1437_v45 = vld [vmem:[#allocation6 + $0x218] sm:$0xff] }
 0x145   :  { %2670 = vmatprep.subr.bf16.mxu0 %v2669_v54  ;;  %v1435_v44 = vld [vmem:[#allocation6 + $0x208] sm:$0xff] }
 0x146   :  { %2660 = vmatpush1.bf16.msra.mxu1 %v2659_v52  ;;  %v1409_v52 = vld [vmem:[#allocation6 + $0x138] sm:$0xff] }
 0x147   :  { %2662 = vmatprep.subr.bf16.mxu1 %v2661_v55  ;;  %851 = vmatmul.mubr.f32.gmra.mrb[2].mxu0 %v136_v60  ;;  %v2701_v54 = vpack.c.bf16 %v1409_v52, %v1407_v51  ;;  %v1406_v55 = vld [vmem:[#allocation6 + $0x120] sm:$0xff]  ;;  %v1711_v51 = vld [vmem:[#allocation9 + $0x8] sm:$0xff]  ;;  %v1728_v52 = vld [vmem:[#allocation9 + $0x90] sm:$0xff] }
 0x148   :  { %856 = vmatprep.mubr.f32.mxu0 %v144_v63  ;;  %2672 = vmatpush1.bf16.msra.mxu0 %v2671_v2  ;;  %v1415_v2 = vld [vmem:[#allocation6 + $0x168] sm:$0xff] }
 0x149   :  { %1225 = vmatmul.mubr.f32.vlgmr.msra.gmra.mrb[10].mxu1 %v129_v50  ;;  %2674 = vmatprep.subr.bf16.mxu0 %v2673_v3  ;;  %v2978_v50 = vld [vmem:[%s3676_s0 + $0x68] sm:$0xff]  ;;  %v1417_v3 = vld [vmem:[#allocation6 + $0x178] sm:$0xff] }
 0x14a   :  { %1230 = vmatprep.mubr.f32.mxu1 %v137_v53  ;;  %2664 = vmatpush1.bf16.msra.mxu1 %v2663_v1  ;;  %v2699_v53 = vpack.c.bf16 %v1404_v49, %v1402_v48  ;;  %v2980_v1 = vld [vmem:[%s3676_s0 + $0xd8] sm:$0xff]  ;;  %v2709_v5 = vpack.c.bf16 %v1417_v3, %v1415_v2  ;;  %v1727_v48 = vld [vmem:[#allocation9 + $0x88] sm:$0xff]  ;;  %v1710_v49 = vld [vmem:[#allocation9] sm:$0xff] }
 0x14b   :  { %857 = vmatmul.mubr.f32.gmra.mrb[4].mxu0 %v143_v6  ;;  %v1733_v2 = vld [vmem:[#allocation9 + $0xb8] sm:$0xff] }
 0x14c   :  { %862 = vmatprep.mubr.f32.mxu0 %v151_v9  ;;  %2676 = vmatpush1.bf16.msra.mxu0 %v2675_v10  ;;  %v1421_v10 = vld [vmem:[#allocation6 + $0x198] sm:$0xff] }
 0x14d   :  { %1231 = vmatmul.mubr.f32.gmra.mrb[12].mxu1 %v136_v60  ;;  %2678 = vmatprep.subr.bf16.mxu0 %v2677_v11  ;;  %v2703_v60 = vpack.c.bf16 %v1408_v56, %v1406_v55  ;;  %v1712_v56 = vld [vmem:[#allocation9 + $0x10] sm:$0xff] }
 0x14e   :  { %1236 = vmatprep.mubr.f32.mxu1 %v144_v63  ;;  %v1412_v63 = vld [vmem:[#allocation6 + $0x150] sm:$0xff] }
 0x14f   :  { %863 = vmatmul.mubr.f32.gmra.mrb[6].mxu0 %v150_v14  ;;  %v2707_v4 = vpack.c.bf16 %v1412_v63, %v1410_v62  ;;  %v1714_v62 = vld [vmem:[#allocation9 + $0x20] sm:$0xff]  ;;  %v1715_v63 = vld [vmem:[#allocation9 + $0x28] sm:$0xff] }
 0x150   :  { %868 = vmatprep.mubr.f32.mxu0 %v158_v17  ;;  %2680 = vmatpush1.bf16.msra.mxu0 %v2679_v18  ;;  %v2717_v18 = vpack.c.bf16 %v1425_v16, %v1423_v15  ;;  %v2803_v3 = vpack.c.bf16 %v1715_v63, %v1714_v62  ;;  %v1445_v62 = vld [vmem:[#allocation6 + $0x258] sm:$0xff] }
 0x151   :  { %1237 = vmatmul.mubr.f32.gmra.mrb[14].mxu1 %v143_v6  ;;  %2682 = vmatprep.subr.bf16.mxu0 %v2681_v19  ;;  %v1414_v6 = vld [vmem:[#allocation6 + $0x160] sm:$0xff] }
 0x152   :  { %1242 = vmatprep.mubr.f32.mxu1 %v151_v9  ;;  %v1419_v9 = vld [vmem:[#allocation6 + $0x188] sm:$0xff]  ;;  %v2711_v11 = vpack.c.bf16 %v1416_v7, %v1414_v6  ;;  %v1422_v19 = vld [vmem:[#allocation6 + $0x1a0] sm:$0xff] }
 0x153   :  { %869 = vmatmul.mubr.f32.gmra.mrb[8].mxu0 %v157_v22  ;;  %v2713_v12 = vpack.c.bf16 %v1421_v10, %v1419_v9  ;;  %v2719_v21 = vpack.c.bf16 %v1424_v20, %v1422_v19  ;;  %v1717_v6 = vld [vmem:[#allocation9 + $0x38] sm:$0xff]  ;;  %v1734_v7 = vld [vmem:[#allocation9 + $0xc0] sm:$0xff]  ;;  %v1739_v20 = vld [vmem:[#allocation9 + $0xe8] sm:$0xff] }
 0x154   :  { %2684 = vmatpush1.bf16.msra.mxu0 %v2683_v25  ;;  %v1738_v19 = vld [vmem:[#allocation9 + $0xe0] sm:$0xff] }
 0x155   :  { %1243 = vmatmul.mubr.f32.gmra.mrb[16].mxu1 %v150_v14  ;;  %2686 = vmatprep.subr.bf16.mxu0 %v2685_v26  ;;  %v1420_v14 = vld [vmem:[#allocation6 + $0x190] sm:$0xff] }
 0x156   :  { %1248 = vmatprep.mubr.f32.mxu1 %v158_v17  ;;  %v2715_v17 = vpack.c.bf16 %v1420_v14, %v1418_v13  ;;  %v1736_v13 = vld [vmem:[#allocation9 + $0xd0] sm:$0xff]  ;;  %v1737_v14 = vld [vmem:[#allocation9 + $0xd8] sm:$0xff] }
 0x157   :  { %v2813_v16 = vpack.c.bf16 %v1737_v14, %v1736_v13 }
 0x158   :  { %2688 = vmatpush1.bf16.msra.mxu0 %v2687_v31  ;;  %v1429_v31 = vld [vmem:[#allocation6 + $0x1d8] sm:$0xff] }
 0x159   :  { %1249 = vmatmul.mubr.f32.gmra.mrb[18].mxu1 %v157_v22  ;;  %2690 = vmatprep.subr.bf16.mxu0 %v2689_v32  ;;  %v2721_v32 = vpack.c.bf16 %v1429_v31, %v1427_v30  ;;  %v2817_v30 = vpack.c.bf16 %v1739_v20, %v1738_v19  ;;  %v554_v31 = vlaneseq  ;;  %v1446_v19 = vld [vmem:[#allocation6 + $0x260] sm:$0xff] }
 0x15a   :  { %1319 = vmatprep.mubr.f32.mxu1 %v3157_v0 }
 0x15c   :  { %v3427_v38 = vpop.f32.mrb[0].mxu1  ;;  %2692 = vmatpush1.bf16.msra.mxu0 %v2691_v37  ;;  %v1433_v37 = vld [vmem:[#allocation6 + $0x1f8] sm:$0xff] }
 0x15d   :  { %2101 = vmatmul.mubr.msk.f32.vlgmr.msra.gmra.mrb[10].mxu1 %vm574_vm0, %v2977_v42  ;;  %v3433_v43 = vpop.f32.mrb[1].mxu1  ;;  %2694 = vmatprep.subr.bf16.mxu0 %v2693_v39  ;;  %v2725_v39 = vpack.c.bf16 %v1433_v37, %v1431_v36  ;;  %v2727_v42 = vpack.c.bf16 %v1432_v41, %v1430_v40 }
 0x15e   :  { %1325 = vmatprep.mubr.f32.mxu1 %v3157_v0 }
 0x160   :  { %2696 = vmatpush1.bf16.msra.mxu0 %v2695_v46  ;;  %v2729_v46 = vpack.c.bf16 %v1437_v45, %v1435_v44  ;;  %v1434_v45 = vld [vmem:[#allocation6 + $0x200] sm:$0xff] }
 0x161   :  { %2102 = vmatmul.mubr.msk.f32.gmra.mrb[12].mxu1 %vm574_vm0, %v2978_v50  ;;  %2698 = vmatprep.subr.bf16.mxu0 %v2697_v47  ;;  %v1726_v47 = vld [vmem:[#allocation9 + $0x80] sm:$0xff] }
 0x162   :  { %1331 = vmatprep.mubr.f32.mxu1 %v3157_v0  ;;  %v2793_v50 = vpack.c.bf16 %v1727_v48, %v1726_v47 }
 0x164   :  { %2700 = vmatpush1.bf16.msra.mxu0 %v2699_v53  ;;  %v1729_v53 = vld [vmem:[#allocation9 + $0x98] sm:$0xff]  ;;  %2794 = vmatprep.subr.bf16.mxu1 %v2793_v50 }
 0x165   :  { %2103 = vmatmul.mubr.msk.f32.gmra.mrb[14].mxu1 %vm574_vm0, %v2979_v57  ;;  %2702 = vmatprep.subr.bf16.mxu0 %v2701_v54  ;;  %v2795_v54 = vpack.c.bf16 %v1711_v51, %v1710_v49  ;;  %v2797_v55 = vpack.c.bf16 %v1729_v53, %v1728_v52  ;;  %v1713_v57 = vld [vmem:[#allocation9 + $0x18] sm:$0xff]  ;;  %v1439_v49 = vld [vmem:[#allocation6 + $0x228] sm:$0xff] }
 0x166   :  { %1337 = vmatprep.mubr.f32.mxu1 %v3157_v0  ;;  %v1441_v50 = vld [vmem:[#allocation6 + $0x238] sm:$0xff] }
 0x167   :  { %2796 = vmatpush3.bf16.msra.mxu1 %v2795_v54 }
 0x168   :  { %2704 = vmatpush1.bf16.msra.mxu0 %v2703_v60  ;;  %v2799_v60 = vpack.c.bf16 %v1713_v57, %v1712_v56  ;;  %2798 = vmatprep.subr.bf16.mxu1 %v2797_v55 }
 0x169   :  { %2104 = vmatmul.mubr.msk.f32.gmra.mrb[16].mxu1 %vm574_vm0, %v2980_v1  ;;  %2706 = vmatprep.subr.bf16.mxu0 %v2705_v61  ;;  %v2801_v61 = vpack.c.bf16 %v1731_v59, %v1730_v58  ;;  %v1732_v1 = vld [vmem:[#allocation9 + $0xb0] sm:$0xff]  ;;  %v2733_v58 = vpack.c.bf16 %v1441_v50, %v1439_v49  ;;  %v1438_v59 = vld [vmem:[#allocation6 + $0x220] sm:$0xff] }
 0x16a   :  { %1343 = vmatprep.mubr.f32.mxu1 %v3157_v0  ;;  %v1457_v50 = vld [vmem:[#allocation6 + $0x2b8] sm:$0xff] }
 0x16b   :  { %2800 = vmatpush3.bf16.msra.mxu1 %v2799_v60 }
 0x16c   :  { %2708 = vmatpush1.bf16.msra.mxu0 %v2707_v4  ;;  %2802 = vmatprep.subr.bf16.mxu1 %v2801_v61  ;;  %v2805_v4 = vpack.c.bf16 %v1733_v2, %v1732_v1 }
 0x16d   :  { %2105 = vmatmul.mubr.msk.f32.gmra.mrb[18].mxu1 %vm574_vm0, %v2981_v8  ;;  %2710 = vmatprep.subr.bf16.mxu0 %v2709_v5  ;;  %v1716_v5 = vld [vmem:[#allocation9 + $0x30] sm:$0xff]  ;;  %v1735_v8 = vld [vmem:[#allocation9 + $0xc8] sm:$0xff] }
 0x16e   :  { %v2807_v9 = vpack.c.bf16 %v1717_v6, %v1716_v5  ;;  %v2809_v10 = vpack.c.bf16 %v1735_v8, %v1734_v7  ;;  %v1442_v7 = vld [vmem:[#allocation6 + $0x240] sm:$0xff] }
 0x16f   :  { %2804 = vmatpush3.bf16.msra.mxu1 %v2803_v3 }
 0x170   :  { %2712 = vmatpush1.bf16.msra.mxu0 %v2711_v11  ;;  %v3455_v22 = vpop.f32.mrb[2].mxu1  ;;  %2806 = vmatprep.subr.bf16.mxu1 %v2805_v4  ;;  %v1718_v11 = vld [vmem:[#allocation9 + $0x40] sm:$0xff] }
 0x171   :  { %2714 = vmatprep.subr.bf16.mxu0 %v2713_v12  ;;  %v3457_v23 = vpop.f32.mrb[3].mxu1  ;;  %v1719_v12 = vld [vmem:[#allocation9 + $0x48] sm:$0xff] }
 0x172   :  { %v2811_v15 = vpack.c.bf16 %v1719_v12, %v1718_v11  ;;  %v1449_v11 = vld [vmem:[#allocation6 + $0x278] sm:$0xff] }
 0x173   :  { %2808 = vmatpush3.bf16.msra.mxu1 %v2807_v9 }
 0x174   :  { %2716 = vmatpush1.bf16.msra.mxu0 %v2715_v17  ;;  %v3459_v24 = vpop.f32.mrb[4].mxu1  ;;  %2810 = vmatprep.subr.bf16.mxu1 %v2809_v10  ;;  %v1720_v17 = vld [vmem:[#allocation9 + $0x50] sm:$0xff]  ;;  %v1447_v10 = vld [vmem:[#allocation6 + $0x268] sm:$0xff] }
 0x175   :  { %2718 = vmatprep.subr.bf16.mxu0 %v2717_v18  ;;  %v3461_v25 = vpop.f32.mrb[5].mxu1  ;;  %v1721_v18 = vld [vmem:[#allocation9 + $0x58] sm:$0xff] }
 0x177   :  { %2812 = vmatpush3.bf16.msra.mxu1 %v2811_v15 }
 0x178   :  { %2720 = vmatpush1.bf16.msra.mxu0 %v2719_v21  ;;  %v3463_v26 = vpop.f32.mrb[6].mxu1  ;;  %v2815_v21 = vpack.c.bf16 %v1721_v18, %v1720_v17  ;;  %2814 = vmatprep.subr.bf16.mxu1 %v2813_v16  ;;  %v2741_v18 = vpack.c.bf16 %v1449_v11, %v1447_v10 }
 0x179   :  { %v3465_v27 = vpop.f32.mrb[7].mxu1  ;;  %2722 = vmatprep.subr.bf16.mxu0 %v2721_v32  ;;  %v3471_v32 = vshrl.u32 %v554_v31, 7  ;;  %v1453_v31 = vld [vmem:[#allocation6 + $0x298] sm:$0xff] }
 0x17b   :  { %2816 = vmatpush3.bf16.msra.mxu1 %v2815_v21  ;;  %v556_v33 = vsub.s32 0, %v3471_v32 }
 0x17c   :  { %v3467_v28 = vpop.f32.mrb[8].mxu1  ;;  %2724 = vmatpush1.bf16.msra.mxu0 %v2723_v35  ;;  %2818 = vmatprep.subr.bf16.mxu1 %v2817_v30  ;;  %v560_v35 = vsub.s32 1, %v3471_v32  ;;  %v1451_v30 = vld [vmem:[#allocation6 + $0x288] sm:$0xff] }
 0x17d   :  { %v3469_v29 = vpop.f32.mrb[9].mxu1  ;;  %2726 = vmatprep.subr.bf16.mxu0 %v2725_v39  ;;  %v3480_v36 = vrot.slane %v3474_v34, %v556_v33 }
 0x17e   :  { %v3485_v37 = vrot.slane %v3474_v34, %v560_v35 }
 0x180   :  { %2728 = vmatpush1.bf16.msra.mxu0 %v2727_v42 }
 0x181   :  { %2730 = vmatprep.subr.bf16.mxu0 %v2729_v46  ;;  %v1436_v46 = vld [vmem:[#allocation6 + $0x210] sm:$0xff] }
 0x182   :  { %v2731_v55 = vpack.c.bf16 %v1436_v46, %v1434_v45  ;;  %v2745_v46 = vpack.c.bf16 %v1453_v31, %v1451_v30 }
 0x216   :  { %v846_v39 = vpop.f32.mrb[0].mxu0 }
 0x217   :  { %v2861_v40 = vadd.f32 %v846_v39, %v3480_v36  ;;  %v848_v41 = vpop.f32.mrb[1].mxu0 }
 0x218   :  { %v2863_v42 = vadd.f32 %v848_v41, %v3485_v37 }
 0x219   :  { %v2862_v44 = vadd.f32 %v2861_v40, %v3427_v38  ;;  %v1440_v38 = vld [vmem:[#allocation6 + $0x230] sm:$0xff] }
 0x21a   :  { %v2864_v47 = vadd.f32 %v2863_v42, %v3433_v43  ;;  %v852_v48 = vpop.f32.mrb[2].mxu0  ;;  %v1443_v43 = vld [vmem:[#allocation6 + $0x248] sm:$0xff]  ;;  %v2735_v4 = vpack.c.bf16 %v1440_v38, %v1438_v59 }
 0x21b   :  { %v2865_v51 = vadd.f32 %v852_v48, %v3480_v36  ;;  %v854_v52 = vpop.f32.mrb[3].mxu0  ;;  %v1350_v56 = vmax.f32 %v2862_v44, 0.0  ;;  %v2737_v6 = vpack.c.bf16 %v1445_v62, %v1443_v43  ;;  %v1452_v48 = vld [vmem:[#allocation6 + $0x290] sm:$0xff]  ;;  %v1463_v62 = vld [vmem:[#allocation6 + $0x2e8] sm:$0xff] }
 0x21c   :  { %v1351_v53 = vmax.f32 %v2864_v47, 0.0  ;;  %v2867_v54 = vadd.f32 %v854_v52, %v3485_v37  ;;  %v1450_v47 = vld [vmem:[#allocation6 + $0x280] sm:$0xff]  ;;  %v1460_v43 = vld [vmem:[#allocation6 + $0x2d0] sm:$0xff] }
 0x21d   :  { %v2866_v57 = vadd.f32 %v2865_v51, %v3455_v22 }
 0x21e   :  { %v2868_v60 = vadd.f32 %v2867_v54, %v3457_v23  ;;  %v858_v61 = vpop.f32.mrb[4].mxu0  ;;  %1574 = vmatprep.mubr.f32.mxu0 %v1351_v53  ;;  %v1444_v23 = vld [vmem:[#allocation6 + $0x250] sm:$0xff]  ;;  %v1454_v54 = vld [vmem:[#allocation6 + $0x2a0] sm:$0xff] }
 0x21f   :  { %v2869_v63 = vadd.f32 %v858_v61, %v3480_v36  ;;  %v860_v1 = vpop.f32.mrb[5].mxu0  ;;  %1575 = vmatmul.mubr.f32.vlgmr.msra.gmra.mrb[10].mxu0 %v1350_v56  ;;  %v1354_v5 = vmax.f32 %v2866_v57, 0.0  ;;  %v2739_v16 = vpack.c.bf16 %v1444_v23, %v1442_v7  ;;  %v1459_v56 = vld [vmem:[#allocation6 + $0x2c8] sm:$0xff]  ;;  %v1461_v57 = vld [vmem:[#allocation6 + $0x2d8] sm:$0xff]  ;;  %v1458_v61 = vld [vmem:[#allocation6 + $0x2c0] sm:$0xff] }
 0x220   :  { %v1355_v2 = vmax.f32 %v2868_v60, 0.0  ;;  %v2871_v3 = vadd.f32 %v860_v1, %v3485_v37  ;;  %2732 = vmatpush1.bf16.msra.mxu0 %v2731_v55  ;;  %v1456_v55 = vld [vmem:[#allocation6 + $0x2b0] sm:$0xff]  ;;  %v2753_v60 = vpack.c.bf16 %v1461_v57, %v1459_v56  ;;  %v1467_v7 = vld [vmem:[#allocation6 + $0x308] sm:$0xff]  ;;  %v1469_v23 = vld [vmem:[#allocation6 + $0x318] sm:$0xff] }
 0x221   :  { %v2870_v22 = vadd.f32 %v2869_v63, %v3459_v24  ;;  %2734 = vmatprep.subr.bf16.mxu0 %v2733_v58  ;;  %v2751_v59 = vpack.c.bf16 %v1456_v55, %v1454_v54  ;;  %v1465_v63 = vld [vmem:[#allocation6 + $0x2f8] sm:$0xff]  ;;  %v2761_v11 = vpack.c.bf16 %v1469_v23, %v1467_v7  ;;  %v1486_v56 = vld [vmem:[#allocation6 + $0x3a0] sm:$0xff]  ;;  %v1488_v57 = vld [vmem:[#allocation6 + $0x3b0] sm:$0xff] }
 0x222   :  { %v2872_v8 = vadd.f32 %v2871_v3, %v3461_v25  ;;  %v864_v9 = vpop.f32.mrb[6].mxu0  ;;  %1580 = vmatprep.mubr.f32.mxu0 %v1355_v2  ;;  %v1448_v25 = vld [vmem:[#allocation6 + $0x270] sm:$0xff] }
 0x223   :  { %v2873_v12 = vadd.f32 %v864_v9, %v3480_v36  ;;  %v866_v13 = vpop.f32.mrb[7].mxu0  ;;  %1581 = vmatmul.mubr.f32.gmra.mrb[12].mxu0 %v1354_v5  ;;  %v1358_v24 = vmax.f32 %v2870_v22, 0.0  ;;  %v2743_v44 = vpack.c.bf16 %v1448_v25, %v1446_v19  ;;  %v2757_v5 = vpack.c.bf16 %v1465_v63, %v1463_v62  ;;  %v1462_v22 = vld [vmem:[#allocation6 + $0x2e0] sm:$0xff]  ;;  %v1472_v25 = vld [vmem:[#allocation6 + $0x330] sm:$0xff]  ;;  %v1495_v63 = vld [vmem:[#allocation6 + $0x3e8] sm:$0xff] }
 0x224   :  { %v1359_v14 = vmax.f32 %v2872_v8, 0.0  ;;  %v2875_v15 = vadd.f32 %v866_v13, %v3485_v37  ;;  %2736 = vmatpush1.bf16.msra.mxu0 %v2735_v4  ;;  %v2755_v4 = vpack.c.bf16 %v1460_v43, %v1458_v61  ;;  %v1468_v13 = vld [vmem:[#allocation6 + $0x310] sm:$0xff]  ;;  %v1470_v19 = vld [vmem:[#allocation6 + $0x320] sm:$0xff] }
 0x225   :  { %v2874_v17 = vadd.f32 %v2873_v12, %v3463_v26  ;;  %2738 = vmatprep.subr.bf16.mxu0 %v2737_v6  ;;  %v1464_v6 = vld [vmem:[#allocation6 + $0x2f0] sm:$0xff]  ;;  %v1466_v12 = vld [vmem:[#allocation6 + $0x300] sm:$0xff] }
 0x226   :  { %v2876_v20 = vadd.f32 %v2875_v15, %v3465_v27  ;;  %v870_v21 = vpop.f32.mrb[8].mxu0  ;;  %1586 = vmatprep.mubr.f32.mxu0 %v1359_v14  ;;  %v568_v27 = vsub.s32 3, %v3471_v32  ;;  %v2759_v10 = vpack.c.bf16 %v1464_v6, %v1462_v22  ;;  %v1471_v14 = vld [vmem:[#allocation6 + $0x328] sm:$0xff]  ;;  %v1473_v15 = vld [vmem:[#allocation6 + $0x338] sm:$0xff]  ;;  %v1490_v43 = vld [vmem:[#allocation6 + $0x3c0] sm:$0xff] }
 0x227   :  { %v2877_v39 = vadd.f32 %v870_v21, %v3480_v36  ;;  %v872_v40 = vpop.f32.mrb[9].mxu0  ;;  %1587 = vmatmul.mubr.f32.gmra.mrb[14].mxu0 %v1358_v24  ;;  %v1362_v26 = vmax.f32 %v2874_v17, 0.0  ;;  %v1455_v36 = vld [vmem:[#allocation6 + $0x2a8] sm:$0xff]  ;;  %v2763_v17 = vpack.c.bf16 %v1468_v13, %v1466_v12  ;;  %v1477_v21 = vld [vmem:[#allocation6 + $0x358] sm:$0xff]  ;;  %v1492_v62 = vld [vmem:[#allocation6 + $0x3d0] sm:$0xff] }
 0x228   :  { %v1363_v41 = vmax.f32 %v2876_v20, 0.0  ;;  %v2879_v42 = vadd.f32 %v872_v40, %v3485_v37  ;;  %2740 = vmatpush1.bf16.msra.mxu0 %v2739_v16  ;;  %v2747_v37 = vpack.c.bf16 %v1452_v48, %v1450_v47  ;;  %v3509_v53 = vrot.slane %v3474_v34, %v568_v27  ;;  %v1475_v20 = vld [vmem:[#allocation6 + $0x348] sm:$0xff]  ;;  %v1478_v27 = vld [vmem:[#allocation6 + $0x360] sm:$0xff]  ;;  %v1480_v47 = vld [vmem:[#allocation6 + $0x370] sm:$0xff] }
 0x229   :  { %v2878_v45 = vadd.f32 %v2877_v39, %v3467_v28  ;;  %2742 = vmatprep.subr.bf16.mxu0 %v2741_v18  ;;  %v2749_v28 = vpack.c.bf16 %v1457_v50, %v1455_v36  ;;  %v2765_v18 = vpack.c.bf16 %v1473_v15, %v1471_v14  ;;  %v2767_v39 = vpack.c.bf16 %v1472_v25, %v1470_v19  ;;  %v1483_v48 = vld [vmem:[#allocation6 + $0x388] sm:$0xff]  ;;  %v1494_v6 = vld [vmem:[#allocation6 + $0x3e0] sm:$0xff]  ;;  %v1496_v7 = vld [vmem:[#allocation6 + $0x3f0] sm:$0xff] }
 0x22a   :  { %v2880_v49 = vadd.f32 %v2879_v42, %v3469_v29  ;;  %1592 = vmatprep.mubr.f32.mxu0 %v1363_v41  ;;  %v2769_v40 = vpack.c.bf16 %v1477_v21, %v1475_v20  ;;  %v1474_v41 = vld [vmem:[#allocation6 + $0x340] sm:$0xff]  ;;  %v1476_v42 = vld [vmem:[#allocation6 + $0x350] sm:$0xff]  ;;  %v2775_v36 = vpack.c.bf16 %v1480_v47, %v1478_v27  ;;  %v2791_v23 = vpack.c.bf16 %v1496_v7, %v1494_v6 }
 0x22b   :  { %1593 = vmatmul.mubr.f32.gmra.mrb[16].mxu0 %v1362_v26  ;;  %v1366_v52 = vmax.f32 %v2878_v45, 0.0  ;;  %v1481_v26 = vld [vmem:[#allocation6 + $0x378] sm:$0xff]  ;;  %v2771_v45 = vpack.c.bf16 %v1476_v42, %v1474_v41  ;;  %v1850_v7 = vld [vmem:[%s3683_s7 + $0x30] sm:$0xff] }
 0x22c   :  { %v1367_v51 = vmax.f32 %v2880_v49, 0.0  ;;  %2744 = vmatpush1.bf16.msra.mxu0 %v2743_v44  ;;  %v1479_v44 = vld [vmem:[#allocation6 + $0x368] sm:$0xff]  ;;  %v1485_v49 = vld [vmem:[#allocation6 + $0x398] sm:$0xff] }
 0x22d   :  { %2746 = vmatprep.subr.bf16.mxu0 %v2745_v46  ;;  %v2773_v46 = vpack.c.bf16 %v1481_v26, %v1479_v44  ;;  %v2777_v50 = vpack.c.bf16 %v1485_v49, %v1483_v48  ;;  %v1740_v41 = vld [vmem:[#allocation9 + $0xf0] sm:$0xff]  ;;  %v1725_v26 = vld [vmem:[#allocation9 + $0x78] sm:$0xff] }
 0x22e   :  { %1598 = vmatprep.mubr.f32.mxu0 %v1367_v51  ;;  %v1482_v51 = vld [vmem:[#allocation6 + $0x380] sm:$0xff]  ;;  %v1724_v44 = vld [vmem:[#allocation9 + $0x70] sm:$0xff] }
 0x22f   :  { %1599 = vmatmul.mubr.f32.gmra.mrb[18].mxu0 %v1366_v52  ;;  %v1487_v52 = vld [vmem:[#allocation6 + $0x3a8] sm:$0xff]  ;;  %v1844_v49 = vld [vmem:[%s3683_s7] sm:$0xff] }
 0x230   :  { %v3511_v58 = vpop.f32.mrb[10].mxu1  ;;  %2748 = vmatpush1.bf16.msra.mxu0 %v2747_v37  ;;  %v1484_v37 = vld [vmem:[#allocation6 + $0x390] sm:$0xff] }
 0x231   :  { %v1323_v29 = vpop.f32.mrb[11].mxu1  ;;  %2750 = vmatprep.subr.bf16.mxu0 %v2749_v28  ;;  %v1489_v28 = vld [vmem:[#allocation6 + $0x3b8] sm:$0xff]  ;;  %v2779_v54 = vpack.c.bf16 %v1484_v37, %v1482_v51 }
 0x232   :  { %v2882_v38 = vadd.f32 %v1323_v29, %v3509_v53  ;;  %v2781_v55 = vpack.c.bf16 %v1489_v28, %v1487_v52  ;;  %v1491_v29 = vld [vmem:[#allocation6 + $0x3c8] sm:$0xff] }
 0x234   :  { %v1353_v1 = vmax.f32 %v2882_v38, 0.0  ;;  %v3514_v2 = vpop.f32.mrb[12].mxu1  ;;  %2752 = vmatpush1.bf16.msra.mxu0 %v2751_v59  ;;  %v1493_v59 = vld [vmem:[#allocation6 + $0x3d8] sm:$0xff]  ;;  %v2783_v38 = vpack.c.bf16 %v1488_v57, %v1486_v56 }
 0x235   :  { %v3516_v3 = vpop.f32.mrb[13].mxu1  ;;  %2754 = vmatprep.subr.bf16.mxu0 %v2753_v60  ;;  %v564_v60 = vsub.s32 2, %v3471_v32  ;;  %v2785_v61 = vpack.c.bf16 %v1493_v59, %v1491_v29  ;;  %v1846_v32 = vld [vmem:[%s3683_s7 + $0x10] sm:$0xff] }
 0x236   :  { %1669 = vmatprep.mubr.f32.mxu0 %v1353_v1  ;;  %v1497_v1 = vld [vmem:[#allocation6 + $0x3f8] sm:$0xff] }
 0x237   :  { %v2789_v22 = vpack.c.bf16 %v1497_v1, %v1495_v63 }
 0x238   :  { %v3518_v8 = vpop.f32.mrb[14].mxu1  ;;  %2756 = vmatpush1.bf16.msra.mxu0 %v2755_v4  ;;  %v2787_v4 = vpack.c.bf16 %v1492_v62, %v1490_v43  ;;  %v1849_v43 = vld [vmem:[%s3683_s7 + $0x28] sm:$0xff] }
 0x239   :  { %v3520_v9 = vpop.f32.mrb[15].mxu1  ;;  %2758 = vmatprep.subr.bf16.mxu0 %v2757_v5  ;;  %v565_v5 = vrot.slane %v3474_v34, %v564_v60 }
 0x23a   :  { %v2886_v34 = vadd.f32 %v3520_v9, %v3509_v53 }
 0x23b   :  { %v2883_v13 = vadd.f32 %v3514_v2, %v565_v5 }
 0x23c   :  { %v3522_v16 = vpop.f32.mrb[16].mxu1  ;;  %2760 = vmatpush1.bf16.msra.mxu0 %v2759_v10  ;;  %v2881_v10 = vadd.f32 %v3511_v58, %v565_v5 }
 0x23d   :  { %v3524_v24 = vpop.f32.mrb[17].mxu1  ;;  %2762 = vmatprep.subr.bf16.mxu0 %v2761_v11  ;;  %v2884_v11 = vadd.f32 %v3516_v3, %v3509_v53  ;;  %v1356_v15 = vmax.f32 %v2883_v13, 0.0  ;;  %v2887_v19 = vadd.f32 %v3522_v16, %v565_v5  ;;  %v1741_v16 = vld [vmem:[#allocation9 + $0xf8] sm:$0xff] }
 0x23e   :  { %v1352_v12 = vmax.f32 %v2881_v10, 0.0  ;;  %v2888_v58 = vadd.f32 %v3524_v24, %v3509_v53  ;;  %v1722_v24 = vld [vmem:[#allocation9 + $0x60] sm:$0xff]  ;;  %v2821_v42 = vpack.c.bf16 %v1741_v16, %v1740_v41 }
 0x23f   :  { %v1357_v14 = vmax.f32 %v2884_v11, 0.0  ;;  %v1364_v9 = vmax.f32 %v2887_v19, 0.0 }
 0x240   :  { %v3526_v30 = vpop.f32.mrb[18].mxu1  ;;  %2764 = vmatpush1.bf16.msra.mxu0 %v2763_v17  ;;  %v2885_v17 = vadd.f32 %v3518_v8, %v565_v5  ;;  %v1365_v25 = vmax.f32 %v2888_v58, 0.0 }
 0x241   :  { %v3528_v31 = vpop.f32.mrb[19].mxu1  ;;  %2766 = vmatprep.subr.bf16.mxu0 %v2765_v18  ;;  %v1361_v18 = vmax.f32 %v2886_v34, 0.0  ;;  %v2889_v20 = vadd.f32 %v3526_v30, %v565_v5  ;;  %v1498_v30 = vld [vmem:[#allocation7] sm:$0x3] }
 0x242   :  { %v1360_v3 = vmax.f32 %v2885_v17, 0.0  ;;  %v2890_v2 = vadd.f32 %v3528_v31, %v3509_v53  ;;  %v2823_v53 = vpack.c.bf16 %v1725_v26, %v1724_v44  ;;  %v3158_v31 = vmov 0.0|0.0   ;;  %v1852_v17 = vld [vmem:[%s3683_s7 + $0x40] sm:$0xff] }
 0x243   :  { %v1368_v8 = vmax.f32 %v2889_v20, 0.0 }
 0x244   :  { %2768 = vmatpush1.bf16.msra.mxu0 %v2767_v39  ;;  %v1369_v21 = vmax.f32 %v2890_v2, 0.0  ;;  %v1723_v39 = vld [vmem:[#allocation9 + $0x68] sm:$0xff] }
 0x245   :  { %2770 = vmatprep.subr.bf16.mxu0 %v2769_v40  ;;  %v2819_v40 = vpack.c.bf16 %v1723_v39, %v1722_v24  ;;  %v1854_v2 = vld [vmem:[%s3683_s7 + $0x50] sm:$0xff] }
 0x246   :  { %v1858_v39 = vld [vmem:[%s3683_s7 + $0x70] sm:$0xff] }
 0x247   :  { %2820 = vmatpush3.bf16.msra.mxu1 %v2819_v40  ;;  %v1859_v40 = vld [vmem:[%s3683_s7 + $0x78] sm:$0xff] }
 0x248   :  { %2772 = vmatpush1.bf16.msra.mxu0 %v2771_v45  ;;  %2822 = vmatprep.subr.bf16.mxu1 %v2821_v42  ;;  %v1503_v45 = vrot.slane %v1498_v30, %v556_v33  ;;  %v2847_v41 = vpack.c.bf16 %v1859_v40, %v1858_v39  ;;  %v2106_v42 = vld [vmem:[#allocation10] ss:$0 sm:$0xff] }
 0x249   :  { %2774 = vmatprep.subr.bf16.mxu0 %v2773_v46  ;;  %v1507_v46 = vrot.slane %v1498_v30, %v560_v35  ;;  %v1847_v35 = vld [vmem:[%s3683_s7 + $0x18] sm:$0xff]  ;;  %v1963_v30 = vld [vmem:[%s3685_s9 + $0x8] sm:$0xff] }
 0x24a   :  { %v2829_v29 = vpack.c.bf16 %v1847_v35, %v1846_v32  ;;  %v1966_v32 = vld [vmem:[%s3685_s9 + $0x20] sm:$0xff]  ;;  %v1967_v35 = vld [vmem:[%s3685_s9 + $0x28] sm:$0xff] }
 0x24b   :  { %2824 = vmatpush3.bf16.msra.mxu1 %v2823_v53  ;;  %v1962_v53 = vld [vmem:[%s3685_s9] sm:$0xff] }
 0x24c   :  { %2776 = vmatpush1.bf16.msra.mxu0 %v2775_v36  ;;  %2825 = vmatprep.subr.bf16.mxu1 %v3158_v31  ;;  %v1845_v36 = vld [vmem:[%s3683_s7 + $0x8] sm:$0xff] }
 0x24d   :  { %2778 = vmatprep.subr.bf16.mxu0 %v2777_v50  ;;  %v2826_v52 = vpack.c.bf16 %v1845_v36, %v1844_v49  ;;  %v1964_v36 = vld [vmem:[%s3685_s9 + $0x10] sm:$0xff] }
 0x250   :  { %2780 = vmatpush1.bf16.msra.mxu0 %v2779_v54 }
 0x251   :  { %2782 = vmatprep.subr.bf16.mxu0 %v2781_v55 }
 0x254   :  { %2784 = vmatpush1.bf16.msra.mxu0 %v2783_v38 }
 0x255   :  { %2786 = vmatprep.subr.bf16.mxu0 %v2785_v61  ;;  %v1848_v61 = vld [vmem:[%s3683_s7 + $0x20] sm:$0xff] }
 0x258   :  { %2788 = vmatpush1.bf16.msra.mxu0 %v2787_v4  ;;  %v2832_v4 = vpack.c.bf16 %v1849_v43, %v1848_v61 }
 0x259   :  { %2790 = vmatprep.subr.bf16.mxu0 %v2789_v22 }
 0x25c   :  { %2792 = vmatpush1.bf16.msra.mxu0 %v2791_v23  ;;  %v1851_v23 = vld [vmem:[%s3683_s7 + $0x38] sm:$0xff] }
 0x25d   :  { %v2835_v13 = vpack.c.bf16 %v1851_v23, %v1850_v7 }
 0x25f   :  { %1670 = vmatmul.mubr.f32.vlgmr.msra.gmra.mrb[10].mxu0 %v1352_v12 }
 0x260   :  { %1675 = vmatprep.mubr.f32.mxu0 %v1357_v14 }
 0x263   :  { %1676 = vmatmul.mubr.f32.gmra.mrb[12].mxu0 %v1356_v15 }
 0x264   :  { %1681 = vmatprep.mubr.f32.mxu0 %v1361_v18  ;;  %v1853_v18 = vld [vmem:[%s3683_s7 + $0x48] sm:$0xff] }
 0x265   :  { %v2838_v19 = vpack.c.bf16 %v1853_v18, %v1852_v17 }
 0x267   :  { %1682 = vmatmul.mubr.f32.gmra.mrb[14].mxu0 %v1360_v3 }
 0x268   :  { %1687 = vmatprep.mubr.f32.mxu0 %v1365_v25 }
 0x26b   :  { %1688 = vmatmul.mubr.f32.gmra.mrb[16].mxu0 %v1364_v9  ;;  %v1855_v9 = vld [vmem:[%s3683_s7 + $0x58] sm:$0xff] }
 0x26c   :  { %1693 = vmatprep.mubr.f32.mxu0 %v1369_v21  ;;  %v2841_v20 = vpack.c.bf16 %v1855_v9, %v1854_v2  ;;  %v1856_v21 = vld [vmem:[%s3683_s7 + $0x60] sm:$0xff] }
 0x26f   :  { %1694 = vmatmul.mubr.f32.gmra.mrb[18].mxu0 %v1368_v8  ;;  %v1857_v8 = vld [vmem:[%s3683_s7 + $0x68] sm:$0xff] }
 0x270   :  { %v2844_v24 = vpack.c.bf16 %v1857_v8, %v1856_v21 }
 0x332   :  { %v1671_v27 = vpop.f32.mrb[10].mxu0 }
 0x333   :  { %v2891_v47 = vadd.f32 %v1671_v27, %v1503_v45  ;;  %v1673_v48 = vpop.f32.mrb[11].mxu0 }
 0x334   :  { %v2892_v50 = vadd.f32 %v1673_v48, %v1507_v46 }
 0x335   :  { %v1700_v28 = vmax.f32 %v2891_v47, 0.0  ;;  %v2850_v47 = vpack.c.bf16 %v1963_v30, %v1962_v53 }
 0x336   :  { %v1701_v51 = vmax.f32 %v2892_v50, 0.0  ;;  %v1677_v37 = vpop.f32.mrb[12].mxu0  ;;  %v1965_v50 = vld [vmem:[%s3685_s9 + $0x18] sm:$0xff] }
 0x337   :  { %v2893_v33 = vadd.f32 %v1677_v37, %v1503_v45  ;;  %v1679_v54 = vpop.f32.mrb[13].mxu0 }
 0x338   :  { %v2894_v55 = vadd.f32 %v1679_v54, %v1507_v46  ;;  %1813 = vmatprep.mubr.f32.mxu1 %v1701_v51 }
 0x339   :  { %1814 = vmatmul.mubr.f32.vlgmr.msra.gmra.mrb[20].mxu1 %v1700_v28  ;;  %v1702_v59 = vmax.f32 %v2893_v33, 0.0  ;;  %v2853_v28 = vpack.c.bf16 %v1965_v50, %v1964_v36 }
 0x33a   :  { %v1703_v56 = vmax.f32 %v2894_v55, 0.0  ;;  %v1683_v57 = vpop.f32.mrb[14].mxu0  ;;  %2827 = vmatpush3.bf16.msra.mxu1 %v2826_v52 }
 0x33b   :  { %v2895_v38 = vadd.f32 %v1683_v57, %v1503_v45  ;;  %v1685_v60 = vpop.f32.mrb[15].mxu0  ;;  %2828 = vmatprep.subr.bf16.mxu1 %v3158_v31 }
 0x33c   :  { %v2896_v62 = vadd.f32 %v1685_v60, %v1507_v46  ;;  %1818 = vmatprep.mubr.f32.mxu1 %v1703_v56 }
 0x33d   :  { %1819 = vmatmul.mubr.f32.gmra.mrb[22].mxu1 %v1702_v59  ;;  %v1704_v5 = vmax.f32 %v2895_v38, 0.0 }
 0x33e   :  { %v1705_v63 = vmax.f32 %v2896_v62, 0.0  ;;  %v1689_v1 = vpop.f32.mrb[16].mxu0  ;;  %2830 = vmatpush3.bf16.msra.mxu1 %v2829_v29  ;;  %v2856_v29 = vpack.c.bf16 %v1967_v35, %v1966_v32 }
 0x33f   :  { %v2897_v22 = vadd.f32 %v1689_v1, %v1503_v45  ;;  %v1691_v6 = vpop.f32.mrb[17].mxu0  ;;  %2831 = vmatprep.subr.bf16.mxu1 %v3158_v31 }
 0x340   :  { %v2898_v10 = vadd.f32 %v1691_v6, %v1507_v46  ;;  %1823 = vmatprep.mubr.f32.mxu1 %v1705_v63 }
 0x341   :  { %1824 = vmatmul.mubr.f32.gmra.mrb[24].mxu1 %v1704_v5  ;;  %v1706_v14 = vmax.f32 %v2897_v22, 0.0  ;;  %v1968_v5 = vld [vmem:[%s3685_s9 + $0x30] sm:$0xff]  ;;  %v1969_v22 = vld [vmem:[%s3685_s9 + $0x38] sm:$0xff] }
 0x342   :  { %v1707_v11 = vmax.f32 %v2898_v10, 0.0  ;;  %v1695_v12 = vpop.f32.mrb[18].mxu0  ;;  %2833 = vmatpush3.bf16.msra.mxu1 %v2832_v4  ;;  %v2859_v6 = vpack.c.bf16 %v1969_v22, %v1968_v5 }
 0x343   :  { %v2899_v34 = vadd.f32 %v1695_v12, %v1503_v45  ;;  %v1697_v15 = vpop.f32.mrb[19].mxu0  ;;  %2834 = vmatprep.subr.bf16.mxu1 %v3158_v31 }
 0x344   :  { %v2900_v58 = vadd.f32 %v1697_v15, %v1507_v46  ;;  %1828 = vmatprep.mubr.f32.mxu1 %v1707_v11 }
 0x345   :  { %1829 = vmatmul.mubr.f32.gmra.mrb[26].mxu1 %v1706_v14  ;;  %v1708_v25 = vmax.f32 %v2899_v34, 0.0 }
 0x346   :  { %v1709_v3 = vmax.f32 %v2900_v58, 0.0  ;;  %2836 = vmatpush3.bf16.msra.mxu1 %v2835_v13 }
 0x347   :  { %2837 = vmatprep.subr.bf16.mxu1 %v3158_v31 }
 0x348   :  { %1833 = vmatprep.mubr.f32.mxu1 %v1709_v3 }
 0x349   :  { %1834 = vmatmul.mubr.f32.gmra.mrb[28].mxu1 %v1708_v25 }
 0x34a   :  { %2839 = vmatpush3.bf16.msra.mxu1 %v2838_v19  ;;  %2227 = vmatprep.mubr.msk.f32.mxu1 %vm3159_vm1, %v3157_v0 }
 0x34b   :  { %2840 = vmatprep.subr.bf16.mxu1 %v3158_v31 }
 0x34e   :  { %2842 = vmatpush3.bf16.msra.mxu1 %v2841_v20 }
 0x34f   :  { %2843 = vmatprep.subr.bf16.mxu1 %v3158_v31 }
 0x352   :  { %2845 = vmatpush3.bf16.msra.mxu1 %v2844_v24  ;;  %v2108_v24 = vld [vmem:[%s3686_s10] ss:$0 sm:$0xff] }
 0x353   :  { %2846 = vmatprep.subr.bf16.mxu1 %v3158_v31 }
 0x356   :  { %2848 = vmatpush3.bf16.msra.mxu1 %v2847_v41 }
 0x357   :  { %2849 = vmatprep.subr.bf16.mxu1 %v3158_v31 }
 0x40c   :  { %v2146_v16 = vpop.f32.mrb[20].mxu1 }
 0x40d   :  { %v2147_v44 = vpop.f32.mrb[21].mxu1 }
 0x40e   :  { %v2148_v26 = vadd.f32 %v2147_v44, %v2146_v16 }
 0x410   :  { %v1816_v45 = vadd.f32 %v2148_v26, %v2106_v42  ;;  %v2149_v46 = vpop.f32.mrb[22].mxu1 }
 0x411   :  { %v2150_v27 = vpop.f32.mrb[23].mxu1 }
 0x412   :  { %v1839_v48 = vmax.f32 %v1816_v45, 0.0  ;;  %v2151_v49 = vadd.f32 %v2150_v27, %v2149_v46 }
 0x414   :  { %v1821_v51 = vadd.f32 %v2151_v49, %v2106_v42  ;;  %v2152_v37 = vpop.f32.mrb[24].mxu1  ;;  %2228 = vmatmul.mubr.f32.vlgmr.msra.gmra.mrb[30].mxu1 %v1839_v48 }
 0x415   :  { %v2153_v52 = vpop.f32.mrb[25].mxu1  ;;  %2230 = vmatprep.mubr.msk.f32.mxu1 %vm3159_vm1, %v3157_v0  ;;  %2851 = vmatpush3.bf16.msra.mxu1 %v2850_v47 }
 0x416   :  { %v1840_v33 = vmax.f32 %v1821_v51, 0.0  ;;  %v2154_v54 = vadd.f32 %v2153_v52, %v2152_v37  ;;  %2852 = vmatprep.subr.bf16.mxu1 %v3158_v31 }
 0x418   :  { %v1826_v55 = vadd.f32 %v2154_v54, %v2106_v42  ;;  %v2155_v56 = vpop.f32.mrb[26].mxu1  ;;  %2231 = vmatmul.mubr.f32.gmra.mrb[32].mxu1 %v1840_v33 }
 0x419   :  { %v2156_v57 = vpop.f32.mrb[27].mxu1  ;;  %2233 = vmatprep.mubr.msk.f32.mxu1 %vm3159_vm1, %v3157_v0  ;;  %2854 = vmatpush3.bf16.msra.mxu1 %v2853_v28 }
 0x41a   :  { %v1841_v59 = vmax.f32 %v1826_v55, 0.0  ;;  %v2157_v38 = vadd.f32 %v2156_v57, %v2155_v56  ;;  %2855 = vmatprep.subr.bf16.mxu1 %v3158_v31 }
 0x41c   :  { %v1831_v60 = vadd.f32 %v2157_v38, %v2106_v42  ;;  %v2158_v61 = vpop.f32.mrb[28].mxu1  ;;  %2234 = vmatmul.mubr.f32.gmra.mrb[34].mxu1 %v1841_v59 }
 0x41d   :  { %v2159_v43 = vpop.f32.mrb[29].mxu1  ;;  %2236 = vmatprep.mubr.msk.f32.mxu1 %vm3159_vm1, %v3157_v0  ;;  %2857 = vmatpush3.bf16.msra.mxu1 %v2856_v29 }
 0x41e   :  { %v1842_v62 = vmax.f32 %v1831_v60, 0.0  ;;  %v2160_v63 = vadd.f32 %v2159_v43, %v2158_v61  ;;  %2858 = vmatprep.subr.bf16.mxu1 %v3158_v31  ;;  %v2107_v31 = vld [vmem:[#allocation12] ss:$0 sm:$0xff] }
 0x420   :  { %v1836_v1 = vadd.f32 %v2160_v63, %v2106_v42  ;;  %2237 = vmatmul.mubr.f32.gmra.mrb[36].mxu1 %v1842_v62 }
 0x421   :  { %2239 = vmatprep.mubr.msk.f32.mxu1 %vm3159_vm1, %v3157_v0  ;;  %2860 = vmatpush3.bf16.msra.mxu1 %v2859_v6 }
 0x422   :  { %v1843_v4 = vmax.f32 %v1836_v1, 0.0 }
 0x424   :  { %2240 = vmatmul.mubr.f32.gmra.mrb[38].mxu1 %v1843_v4 }
 0x425   :  { %2258 = vmatprep.mubr.msk.f32.mxu1 %vm3159_vm1, %v3157_v0 }
 0x4e7   :  { %v1933_v7 = vpop.f32.mrb[30].mxu1 }
 0x4e8   :  { %v1934_v23 = vadd.f32 %v2107_v31, %v1933_v7  ;;  %v2229_v10 = vpop.f32.mrb[31].mxu1 }
 0x4ea   :  { %v1957_v11 = vmax.f32 %v1934_v23, 0.0 }
 0x4eb   :  { %v1938_v12 = vpop.f32.mrb[32].mxu1 }
 0x4ec   :  { %v1939_v13 = vadd.f32 %v2107_v31, %v1938_v12  ;;  %v2232_v14 = vpop.f32.mrb[33].mxu1  ;;  %2259 = vmatmul.mubr.msk.f32.vlgmr.msra.gmra.mrb[40].mxu1 %vm1977_vm2, %v1957_v11 }
 0x4ed   :  { %2261 = vmatprep.mubr.msk.f32.mxu1 %vm3159_vm1, %v3157_v0 }
 0x4ee   :  { %v1958_v34 = vmax.f32 %v1939_v13, 0.0 }
 0x4ef   :  { %v1943_v15 = vpop.f32.mrb[34].mxu1 }
 0x4f0   :  { %v1944_v17 = vadd.f32 %v2107_v31, %v1943_v15  ;;  %v2235_v18 = vpop.f32.mrb[35].mxu1  ;;  %2262 = vmatmul.mubr.msk.f32.gmra.mrb[42].mxu1 %vm1977_vm2, %v1958_v34 }
 0x4f1   :  { %2264 = vmatprep.mubr.msk.f32.mxu1 %vm3159_vm1, %v3157_v0 }
 0x4f2   :  { %v1959_v58 = vmax.f32 %v1944_v17, 0.0 }
 0x4f3   :  { %v1948_v3 = vpop.f32.mrb[36].mxu1 }
 0x4f4   :  { %v1949_v19 = vadd.f32 %v2107_v31, %v1948_v3  ;;  %v2238_v25 = vpop.f32.mrb[37].mxu1  ;;  %2265 = vmatmul.mubr.msk.f32.gmra.mrb[44].mxu1 %vm1977_vm2, %v1959_v58 }
 0x4f5   :  { %2267 = vmatprep.mubr.msk.f32.mxu1 %vm3159_vm1, %v3157_v0 }
 0x4f6   :  { %v1960_v2 = vmax.f32 %v1949_v19, 0.0 }
 0x4f7   :  { %v1953_v9 = vpop.f32.mrb[38].mxu1 }
 0x4f8   :  { %v1954_v20 = vadd.f32 %v2107_v31, %v1953_v9  ;;  %v2241_v21 = vpop.f32.mrb[39].mxu1  ;;  %2268 = vmatmul.mubr.msk.f32.gmra.mrb[46].mxu1 %vm1977_vm2, %v1960_v2 }
 0x4f9   :  { %2270 = vmatprep.mubr.msk.f32.mxu1 %vm3159_vm1, %v3157_v0 }
 0x4fa   :  { %v1961_v8 = vmax.f32 %v1954_v20, 0.0 }
 0x4fc   :  { %2271 = vmatmul.mubr.msk.f32.gmra.mrb[48].mxu1 %vm1977_vm2, %v1961_v8 }
 0x5bf   :  { %v2059_v39 = vpop.f32.mrb[40].mxu1 }
 0x5c0   :  { %v2060_v40 = vadd.f32 %v2108_v24, %v2059_v39  ;;  %v2260_v41 = vpop.f32.mrb[41].mxu1 }
 0x5c2   :  { %2083 = vst [vmem:[%s3687_s11] sm:$0xff] %v2060_v40 }
 0x5c3   :  { %v2064_v16 = vpop.f32.mrb[42].mxu1 }
 0x5c4   :  { %v2065_v42 = vadd.f32 %v2108_v24, %v2064_v16  ;;  %v2263_v44 = vpop.f32.mrb[43].mxu1 }
 0x5c6   :  { %2084 = vst [vmem:[%s3687_s11 + $0x8] sm:$0xff] %v2065_v42 }
 0x5c7   :  { %v2069_v0 = vpop.f32.mrb[44].mxu1 }
 0x5c8   :  { %v2070_v26 = vadd.f32 %v2108_v24, %v2069_v0  ;;  %v2266_v53 = vpop.f32.mrb[45].mxu1 }
 0x5ca   :  { %2085 = vst [vmem:[%s3687_s11 + $0x10] sm:$0xff] %v2070_v26 }
 0x5cb   :  { %v2074_v30 = vpop.f32.mrb[46].mxu1 }
 0x5cc   :  { %v2075_v45 = vadd.f32 %v2108_v24, %v2074_v30  ;;  %v2269_v46 = vpop.f32.mrb[47].mxu1 }
 0x5ce   :  { %2086 = vst [vmem:[%s3687_s11 + $0x18] sm:$0xff] %v2075_v45 }
 0x5cf   :  { %v2079_v27 = vpop.f32.mrb[48].mxu1 }
 0x5d0   :  { %v2080_v47 = vadd.f32 %v2108_v24, %v2079_v27  ;;  %v2272_v48 = vpop.f32.mrb[49].mxu1 }
 0x5d2   :  { %2087 = vst [vmem:[%s3687_s11 + $0x20] sm:$0xff] %v2080_v47 }
 0x5d3   :  { %2092 = vsyncpa [#allocation3], 1 }
 0x5d4   :  { %2093 = vsyncpa [#allocation5], 1 }
 0x5d5   :  { %2094 = vsyncpa [#allocation8], 1 }
 0x5d6   :  { %2095 = vsyncpa [#allocation11], 1 }

</bundles_post_ra>
